<compile_context>
chip_gen: v7x
topology: tpu7x:2x2x1
jax: 0.10.0
libtpu: 0.0.40
codegen_flags: <defaults>
</compile_context>

<pallas_src>
import math
import functools

import jax
import jax.numpy as jnp
from jax.experimental import pallas as pl
from jax.experimental.pallas import tpu as pltpu

LN_EPS = 1e-5
VMEM_LIMIT = 64 * 1024 * 1024  # explicit scoped-VMEM cap (fits all generations)


def _layernorm(x_f32, g, b):
    """LayerNorm in f32 on a (S, D) tile; g/b are (1, D)."""
    mean = jnp.mean(x_f32, axis=-1, keepdims=True)
    xc = x_f32 - mean
    var = jnp.mean(xc * xc, axis=-1, keepdims=True)
    inv = jax.lax.rsqrt(var + LN_EPS)
    return xc * inv * g + b


# ---------------------------------------------------------------------------
# Single fused kernel:
#   LN1 -> multi-head self-attention -> +residual -> LN2 -> FFN -> +residual
# Grid = (B,).  Weights use constant index_maps so they DMA once.
# ---------------------------------------------------------------------------
def _pre_norm_residual_kernel(x_ref,
                              g1_ref, bt1_ref, wqkv_ref, bqkv_ref, wo_ref, bo_ref,
                              g2_ref, bt2_ref, w1_ref, b1_ref, w2_ref, b2_ref,
                              o_ref, *, H, dh, scale):
    xf = x_ref[0].astype(jnp.float32)                       # (S, D) f32

    # ---- sub-block 1: LN -> MHA -> + residual (all in VMEM) ----
    xn = _layernorm(xf, g1_ref[...], bt1_ref[...])          # (S, D)
    # Fused QKV projection: one lane-dense matmul, bias added once.
    qkv = jnp.dot(xn.astype(wqkv_ref.dtype), wqkv_ref[...],
                  preferred_element_type=jnp.float32) + bqkv_ref[...]   # (S, 3*H*dh)

    Hd = H * dh
    o_heads = []
    for h in range(H):                                      # static, unrolled
        q = qkv[:, h * dh:(h + 1) * dh]
        k = qkv[:, Hd + h * dh: Hd + (h + 1) * dh]
        v = qkv[:, 2 * Hd + h * dh: 2 * Hd + (h + 1) * dh]
        # scores = q @ k^T (contract head dim, no explicit transpose)
        s = jax.lax.dot_general(q, k, (((1,), (1,)), ((), ())),
                                preferred_element_type=jnp.float32) * scale  # (S, S)
        s = s - jnp.max(s, axis=-1, keepdims=True)
        p = jnp.exp(s)
        p = p * pl.reciprocal(jnp.sum(p, axis=-1, keepdims=True), approx=True)
        o_heads.append(jnp.dot(p.astype(v.dtype), v,
                               preferred_element_type=jnp.float32))          # (S, dh)

    o_all = jnp.concatenate(o_heads, axis=-1)               # (S, H*dh), head-major
    attn = jnp.dot(o_all.astype(wo_ref.dtype), wo_ref[...],
                   preferred_element_type=jnp.float32) + bo_ref[...]         # (S, D)
    x1 = attn + xf                                          # residual stays in VMEM/f32

    # ---- sub-block 2: LN -> FFN (Linear/GELU(tanh)/Linear) -> + residual ----
    xn2 = _layernorm(x1, g2_ref[...], bt2_ref[...])
    hid = jnp.dot(xn2.astype(w1_ref.dtype), w1_ref[...],
                  preferred_element_type=jnp.float32) + b1_ref[...]          # (S, Dff)
    hid = jax.nn.gelu(hid, approximate=True)                # tanh GELU in f32
    y = jnp.dot(hid.astype(w2_ref.dtype), w2_ref[...],
                preferred_element_type=jnp.float32) + b2_ref[...]            # (S, D)
    o_ref[0] = (y + x1).astype(o_ref.dtype)                 # single lane-dense store


def pre_norm_residual(x, p, *, H, dh):
    B, S, D = x.shape
    Dqkv = p["wqkv"].shape[1]
    Dff = p["w1"].shape[1]
    kernel = functools.partial(_pre_norm_residual_kernel, H=H, dh=dh,
                               scale=1.0 / math.sqrt(dh))
    const2 = lambda i: (0, 0)
    return pl.pallas_call(
        kernel,
        out_shape=jax.ShapeDtypeStruct((B, S, D), x.dtype),
        grid=(B,),
        in_specs=[
            pl.BlockSpec((1, S, D), lambda i: (i, 0, 0)),   # x
            pl.BlockSpec((1, D), const2),                   # ln1 gamma
            pl.BlockSpec((1, D), const2),                   # ln1 beta
            pl.BlockSpec((D, Dqkv), const2),                # fused Wqkv
            pl.BlockSpec((1, Dqkv), const2),                # fused bqkv
            pl.BlockSpec((H * dh, D), const2),              # Wo (head-major rows)
            pl.BlockSpec((1, D), const2),                   # bo
            pl.BlockSpec((1, D), const2),                   # ln2 gamma
            pl.BlockSpec((1, D), const2),                   # ln2 beta
            pl.BlockSpec((D, Dff), const2),                 # W1
            pl.BlockSpec((1, Dff), const2),                 # b1
            pl.BlockSpec((Dff, D), const2),                 # W2
            pl.BlockSpec((1, D), const2),                   # b2
        ],
        out_specs=pl.BlockSpec((1, S, D), lambda i: (i, 0, 0)),
        compiler_params=pltpu.CompilerParams(
            dimension_semantics=("parallel",),
            vmem_limit_bytes=VMEM_LIMIT),
    )(x,
      p["ln1_g"].reshape(1, D), p["ln1_b"].reshape(1, D),
      p["wqkv"], p["bqkv"].reshape(1, Dqkv),
      p["wo"], p["bo"].reshape(1, D),
      p["ln2_g"].reshape(1, D), p["ln2_b"].reshape(1, D),
      p["w1"], p["b1"].reshape(1, Dff),
      p["w2"], p["b2"].reshape(1, D))


# ---------------------------------------------------------------------------
# Pure-JAX reference (same math) for verification.
# ---------------------------------------------------------------------------
def ref_forward(x, p, *, H, dh):
    def ln(v, g, b):
        m = v.mean(-1, keepdims=True)
        var = ((v - m) ** 2).mean(-1, keepdims=True)
        return (v - m) / jnp.sqrt(var + LN_EPS) * g + b

    B, S, D = x.shape
    Hd = H * dh
    xn = ln(x, p["ln1_g"], p["ln1_b"])
    qkv = xn @ p["wqkv"] + p["bqkv"]
    q = qkv[..., :Hd].reshape(B, S, H, dh).transpose(0, 2, 1, 3)
    k = qkv[..., Hd:2 * Hd].reshape(B, S, H, dh).transpose(0, 2, 1, 3)
    v = qkv[..., 2 * Hd:].reshape(B, S, H, dh).transpose(0, 2, 1, 3)
    s = jnp.einsum("bhqd,bhkd->bhqk", q, k) / math.sqrt(dh)
    a = jax.nn.softmax(s, axis=-1)
    o = jnp.einsum("bhqk,bhkd->bhqd", a, v)
    o = o.transpose(0, 2, 1, 3).reshape(B, S, Hd)
    attn_out = o @ p["wo"] + p["bo"]
    x = attn_out + x
    xn2 = ln(x, p["ln2_g"], p["ln2_b"])
    hid = jax.nn.gelu(xn2 @ p["w1"] + p["b1"], approximate=True)
    ffn_out = hid @ p["w2"] + p["b2"]
    return ffn_out + x


if __name__ == "__main__":
    # Small but lane-dense shapes: D = H*dh = 128, Dff = 256.
    B, S, D = 2, 16, 128
    H, dh = 4, 32
    Dff = 256

    key = jax.random.PRNGKey(0)
    keys = jax.random.split(key, 12)

    params = {
        "ln1_g": jnp.ones((D,), jnp.float32) + 0.02 * jax.random.normal(keys[0], (D,)),
        "ln1_b": 0.02 * jax.random.normal(keys[1], (D,)),
        "ln2_g": jnp.ones((D,), jnp.float32) + 0.02 * jax.random.normal(keys[2], (D,)),
        "ln2_b": 0.02 * jax.random.normal(keys[3], (D,)),
        # fused QKV: (D, 3*H*dh); output proj: (H*dh, D), rows head-major.
        "wqkv": 0.05 * jax.random.normal(keys[4], (D, 3 * H * dh), jnp.float32),
        "bqkv": 0.02 * jax.random.normal(keys[5], (3 * H * dh,), jnp.float32),
        "wo":   0.05 * jax.random.normal(keys[6], (H * dh, D), jnp.float32),
        "bo":   0.02 * jax.random.normal(keys[7], (D,), jnp.float32),
        "w1":   0.05 * jax.random.normal(keys[8], (D, Dff), jnp.float32),
        "b1":   0.02 * jax.random.normal(keys[9], (Dff,), jnp.float32),
        "w2":   0.05 * jax.random.normal(keys[10], (Dff, D), jnp.float32),
        "b2":   0.02 * jax.random.normal(keys[11], (D,), jnp.float32),
    }

    x = jax.random.normal(jax.random.PRNGKey(42), (B, S, D), jnp.float32)

    out = jax.block_until_ready(pre_norm_residual(x, params, H=H, dh=dh))
    ref = jax.block_until_ready(ref_forward(x, params, H=H, dh=dh))

    assert out.shape == (B, S, D)
    max_err = jnp.max(jnp.abs(out - ref))
    # tolerance absorbs the EUP approximate reciprocal in softmax
    assert jnp.allclose(out, ref, atol=2e-3, rtol=2e-3), f"max abs err {max_err}"
    print("KERNEL_OK")
</pallas_src>

<mosaic_0001>
module attributes {stable_mosaic.version = 11 : i64} {
  func.func @_pre_norm_residual_kernel(%arg0: i32, %arg1: memref<1x16x128xf32, #tpu.memory_space<vmem>>, %arg2: memref<1x128xf32, #tpu.memory_space<vmem>>, %arg3: memref<1x128xf32, #tpu.memory_space<vmem>>, %arg4: memref<128x384xf32, #tpu.memory_space<vmem>>, %arg5: memref<1x384xf32, #tpu.memory_space<vmem>>, %arg6: memref<128x128xf32, #tpu.memory_space<vmem>>, %arg7: memref<1x128xf32, #tpu.memory_space<vmem>>, %arg8: memref<1x128xf32, #tpu.memory_space<vmem>>, %arg9: memref<1x128xf32, #tpu.memory_space<vmem>>, %arg10: memref<128x256xf32, #tpu.memory_space<vmem>>, %arg11: memref<1x256xf32, #tpu.memory_space<vmem>>, %arg12: memref<256x128xf32, #tpu.memory_space<vmem>>, %arg13: memref<1x128xf32, #tpu.memory_space<vmem>>, %arg14: memref<1x16x128xf32, #tpu.memory_space<vmem>>) attributes {dimension_semantics = [#tpu.dimension_semantics<parallel>], iteration_bounds = array<i64: 2>, scalar_prefetch = 0 : i64, scratch_operands = 0 : i64, tpu.core_type = #tpu.core_type<tc>, window_params = [{transform_indices = @transform_0, window_bounds = array<i64: 1, 16, 128>}, {pipeline_mode = #tpu.pipeline_mode<synchronous>, transform_indices = @transform_1, window_bounds = array<i64: 1, 128>}, {pipeline_mode = #tpu.pipeline_mode<synchronous>, transform_indices = @transform_2, window_bounds = array<i64: 1, 128>}, {pipeline_mode = #tpu.pipeline_mode<synchronous>, transform_indices = @transform_3, window_bounds = array<i64: 128, 384>}, {pipeline_mode = #tpu.pipeline_mode<synchronous>, transform_indices = @transform_4, window_bounds = array<i64: 1, 384>}, {pipeline_mode = #tpu.pipeline_mode<synchronous>, transform_indices = @transform_5, window_bounds = array<i64: 128, 128>}, {pipeline_mode = #tpu.pipeline_mode<synchronous>, transform_indices = @transform_6, window_bounds = array<i64: 1, 128>}, {pipeline_mode = #tpu.pipeline_mode<synchronous>, transform_indices = @transform_7, window_bounds = array<i64: 1, 128>}, {pipeline_mode = #tpu.pipeline_mode<synchronous>, transform_indices = @transform_8, window_bounds = array<i64: 1, 128>}, {pipeline_mode = #tpu.pipeline_mode<synchronous>, transform_indices = @transform_9, window_bounds = array<i64: 128, 256>}, {pipeline_mode = #tpu.pipeline_mode<synchronous>, transform_indices = @transform_10, window_bounds = array<i64: 1, 256>}, {pipeline_mode = #tpu.pipeline_mode<synchronous>, transform_indices = @transform_11, window_bounds = array<i64: 256, 128>}, {pipeline_mode = #tpu.pipeline_mode<synchronous>, transform_indices = @transform_12, window_bounds = array<i64: 1, 128>}, {transform_indices = @transform_13, window_bounds = array<i64: 1, 16, 128>}]} {
    %c0 = arith.constant 0 : index
    %c0_0 = arith.constant 0 : index
    %c0_1 = arith.constant 0 : index
    %0 = vector.load %arg1[%c0, %c0_0, %c0_1] : memref<1x16x128xf32, #tpu.memory_space<vmem>>, vector<1x16x128xf32>
    %1 = vector.shape_cast %0 : vector<1x16x128xf32> to vector<16x128xf32>
    %c0_2 = arith.constant 0 : index
    %c0_3 = arith.constant 0 : index
    %2 = vector.load %arg2[%c0_2, %c0_3] : memref<1x128xf32, #tpu.memory_space<vmem>>, vector<1x128xf32>
    %c0_4 = arith.constant 0 : index
    %c0_5 = arith.constant 0 : index
    %3 = vector.load %arg3[%c0_4, %c0_5] : memref<1x128xf32, #tpu.memory_space<vmem>>, vector<1x128xf32>
    %cst = arith.constant dense<0.000000e+00> : vector<16xf32>
    %4 = vector.multi_reduction <add>, %1, %cst [1] : vector<16x128xf32> to vector<16xf32>
    %5 = vector.shape_cast %4 : vector<16xf32> to vector<16x1xf32>
    %cst_6 = arith.constant 1.280000e+02 : f32
    %6 = vector.broadcast %cst_6 : f32 to vector<16x1xf32>
    %7 = arith.divf %5, %6 : vector<16x1xf32>
    %8 = vector.broadcast %7 : vector<16x1xf32> to vector<16x128xf32>
    %9 = arith.subf %1, %8 : vector<16x128xf32>
    %10 = arith.mulf %9, %9 : vector<16x128xf32>
    %cst_7 = arith.constant dense<0.000000e+00> : vector<16xf32>
    %11 = vector.multi_reduction <add>, %10, %cst_7 [1] : vector<16x128xf32> to vector<16xf32>
    %12 = vector.shape_cast %11 : vector<16xf32> to vector<16x1xf32>
    %cst_8 = arith.constant 1.280000e+02 : f32
    %13 = vector.broadcast %cst_8 : f32 to vector<16x1xf32>
    %14 = arith.divf %12, %13 : vector<16x1xf32>
    %cst_9 = arith.constant 9.99999974E-6 : f32
    %15 = vector.broadcast %cst_9 : f32 to vector<16x1xf32>
    %16 = arith.addf %14, %15 : vector<16x1xf32>
    %17 = math.rsqrt %16 : vector<16x1xf32>
    %18 = vector.broadcast %17 : vector<16x1xf32> to vector<16x128xf32>
    %19 = arith.mulf %9, %18 : vector<16x128xf32>
    %20 = vector.broadcast %2 : vector<1x128xf32> to vector<16x128xf32>
    %21 = arith.mulf %19, %20 : vector<16x128xf32>
    %22 = vector.broadcast %3 : vector<1x128xf32> to vector<16x128xf32>
    %23 = arith.addf %21, %22 : vector<16x128xf32>
    %c0_10 = arith.constant 0 : index
    %c0_11 = arith.constant 0 : index
    %24 = vector.load %arg4[%c0_10, %c0_11] : memref<128x384xf32, #tpu.memory_space<vmem>>, vector<128x384xf32>
    %cst_12 = arith.constant dense<0.000000e+00> : vector<16x384xf32>
    %25 = tpu.matmul %23, %24, %cst_12 {dimension_numbers = #tpu.dot_dimension_numbers<[1], [0], [0], [1], [0, 0, 1, 1], [], []>} : vector<16x128xf32>, vector<128x384xf32>, vector<16x384xf32> -> vector<16x384xf32>
    %c0_13 = arith.constant 0 : index
    %c0_14 = arith.constant 0 : index
    %26 = vector.load %arg5[%c0_13, %c0_14] : memref<1x384xf32, #tpu.memory_space<vmem>>, vector<1x384xf32>
    %27 = vector.broadcast %26 : vector<1x384xf32> to vector<16x384xf32>
    %28 = arith.addf %25, %27 : vector<16x384xf32>
    %29 = vector.extract_strided_slice %28 {offsets = [0, 0], sizes = [16, 32], strides = [1, 1]} : vector<16x384xf32> to vector<16x32xf32>
    %30 = vector.extract_strided_slice %28 {offsets = [0, 128], sizes = [16, 32], strides = [1, 1]} : vector<16x384xf32> to vector<16x32xf32>
    %31 = vector.extract_strided_slice %28 {offsets = [0, 256], sizes = [16, 32], strides = [1, 1]} : vector<16x384xf32> to vector<16x32xf32>
    %cst_15 = arith.constant dense<0.000000e+00> : vector<16x16xf32>
    %32 = tpu.matmul %29, %30, %cst_15 {dimension_numbers = #tpu.dot_dimension_numbers<[1], [1], [0], [0], [0, 0, 1, 0], [], []>} : vector<16x32xf32>, vector<16x32xf32>, vector<16x16xf32> -> vector<16x16xf32>
    %cst_16 = arith.constant 0.176776692 : f32
    %33 = vector.broadcast %cst_16 : f32 to vector<16x16xf32>
    %34 = arith.mulf %32, %33 : vector<16x16xf32>
    %cst_17 = arith.constant dense<0xFF800000> : vector<16xf32>
    %35 = vector.multi_reduction <maximumf>, %34, %cst_17 [1] : vector<16x16xf32> to vector<16xf32>
    %36 = vector.shape_cast %35 : vector<16xf32> to vector<16x1xf32>
    %37 = vector.broadcast %36 : vector<16x1xf32> to vector<16x16xf32>
    %38 = arith.subf %34, %37 : vector<16x16xf32>
    %39 = math.exp %38 : vector<16x16xf32>
    %cst_18 = arith.constant dense<0.000000e+00> : vector<16xf32>
    %40 = vector.multi_reduction <add>, %39, %cst_18 [1] : vector<16x16xf32> to vector<16xf32>
    %41 = vector.shape_cast %40 : vector<16xf32> to vector<16x1xf32>
    %42 = tpu.reciprocal %41 {approx = true} : vector<16x1xf32> -> vector<16x1xf32>
    %43 = vector.broadcast %42 : vector<16x1xf32> to vector<16x16xf32>
    %44 = arith.mulf %39, %43 : vector<16x16xf32>
    %cst_19 = arith.constant dense<0.000000e+00> : vector<16x32xf32>
    %45 = tpu.matmul %44, %31, %cst_19 {dimension_numbers = #tpu.dot_dimension_numbers<[1], [0], [0], [1], [0, 0, 1, 1], [], []>} : vector<16x16xf32>, vector<16x32xf32>, vector<16x32xf32> -> vector<16x32xf32>
    %46 = vector.extract_strided_slice %28 {offsets = [0, 32], sizes = [16, 32], strides = [1, 1]} : vector<16x384xf32> to vector<16x32xf32>
    %47 = vector.extract_strided_slice %28 {offsets = [0, 160], sizes = [16, 32], strides = [1, 1]} : vector<16x384xf32> to vector<16x32xf32>
    %48 = vector.extract_strided_slice %28 {offsets = [0, 288], sizes = [16, 32], strides = [1, 1]} : vector<16x384xf32> to vector<16x32xf32>
    %cst_20 = arith.constant dense<0.000000e+00> : vector<16x16xf32>
    %49 = tpu.matmul %46, %47, %cst_20 {dimension_numbers = #tpu.dot_dimension_numbers<[1], [1], [0], [0], [0, 0, 1, 0], [], []>} : vector<16x32xf32>, vector<16x32xf32>, vector<16x16xf32> -> vector<16x16xf32>
    %cst_21 = arith.constant 0.176776692 : f32
    %50 = vector.broadcast %cst_21 : f32 to vector<16x16xf32>
    %51 = arith.mulf %49, %50 : vector<16x16xf32>
    %cst_22 = arith.constant dense<0xFF800000> : vector<16xf32>
    %52 = vector.multi_reduction <maximumf>, %51, %cst_22 [1] : vector<16x16xf32> to vector<16xf32>
    %53 = vector.shape_cast %52 : vector<16xf32> to vector<16x1xf32>
    %54 = vector.broadcast %53 : vector<16x1xf32> to vector<16x16xf32>
    %55 = arith.subf %51, %54 : vector<16x16xf32>
    %56 = math.exp %55 : vector<16x16xf32>
    %cst_23 = arith.constant dense<0.000000e+00> : vector<16xf32>
    %57 = vector.multi_reduction <add>, %56, %cst_23 [1] : vector<16x16xf32> to vector<16xf32>
    %58 = vector.shape_cast %57 : vector<16xf32> to vector<16x1xf32>
    %59 = tpu.reciprocal %58 {approx = true} : vector<16x1xf32> -> vector<16x1xf32>
    %60 = vector.broadcast %59 : vector<16x1xf32> to vector<16x16xf32>
    %61 = arith.mulf %56, %60 : vector<16x16xf32>
    %cst_24 = arith.constant dense<0.000000e+00> : vector<16x32xf32>
    %62 = tpu.matmul %61, %48, %cst_24 {dimension_numbers = #tpu.dot_dimension_numbers<[1], [0], [0], [1], [0, 0, 1, 1], [], []>} : vector<16x16xf32>, vector<16x32xf32>, vector<16x32xf32> -> vector<16x32xf32>
    %63 = vector.extract_strided_slice %28 {offsets = [0, 64], sizes = [16, 32], strides = [1, 1]} : vector<16x384xf32> to vector<16x32xf32>
    %64 = vector.extract_strided_slice %28 {offsets = [0, 192], sizes = [16, 32], strides = [1, 1]} : vector<16x384xf32> to vector<16x32xf32>
    %65 = vector.extract_strided_slice %28 {offsets = [0, 320], sizes = [16, 32], strides = [1, 1]} : vector<16x384xf32> to vector<16x32xf32>
    %cst_25 = arith.constant dense<0.000000e+00> : vector<16x16xf32>
    %66 = tpu.matmul %63, %64, %cst_25 {dimension_numbers = #tpu.dot_dimension_numbers<[1], [1], [0], [0], [0, 0, 1, 0], [], []>} : vector<16x32xf32>, vector<16x32xf32>, vector<16x16xf32> -> vector<16x16xf32>
    %cst_26 = arith.constant 0.176776692 : f32
    %67 = vector.broadcast %cst_26 : f32 to vector<16x16xf32>
    %68 = arith.mulf %66, %67 : vector<16x16xf32>
    %cst_27 = arith.constant dense<0xFF800000> : vector<16xf32>
    %69 = vector.multi_reduction <maximumf>, %68, %cst_27 [1] : vector<16x16xf32> to vector<16xf32>
    %70 = vector.shape_cast %69 : vector<16xf32> to vector<16x1xf32>
    %71 = vector.broadcast %70 : vector<16x1xf32> to vector<16x16xf32>
    %72 = arith.subf %68, %71 : vector<16x16xf32>
    %73 = math.exp %72 : vector<16x16xf32>
    %cst_28 = arith.constant dense<0.000000e+00> : vector<16xf32>
    %74 = vector.multi_reduction <add>, %73, %cst_28 [1] : vector<16x16xf32> to vector<16xf32>
    %75 = vector.shape_cast %74 : vector<16xf32> to vector<16x1xf32>
    %76 = tpu.reciprocal %75 {approx = true} : vector<16x1xf32> -> vector<16x1xf32>
    %77 = vector.broadcast %76 : vector<16x1xf32> to vector<16x16xf32>
    %78 = arith.mulf %73, %77 : vector<16x16xf32>
    %cst_29 = arith.constant dense<0.000000e+00> : vector<16x32xf32>
    %79 = tpu.matmul %78, %65, %cst_29 {dimension_numbers = #tpu.dot_dimension_numbers<[1], [0], [0], [1], [0, 0, 1, 1], [], []>} : vector<16x16xf32>, vector<16x32xf32>, vector<16x32xf32> -> vector<16x32xf32>
    %80 = vector.extract_strided_slice %28 {offsets = [0, 96], sizes = [16, 32], strides = [1, 1]} : vector<16x384xf32> to vector<16x32xf32>
    %81 = vector.extract_strided_slice %28 {offsets = [0, 224], sizes = [16, 32], strides = [1, 1]} : vector<16x384xf32> to vector<16x32xf32>
    %82 = vector.extract_strided_slice %28 {offsets = [0, 352], sizes = [16, 32], strides = [1, 1]} : vector<16x384xf32> to vector<16x32xf32>
    %cst_30 = arith.constant dense<0.000000e+00> : vector<16x16xf32>
    %83 = tpu.matmul %80, %81, %cst_30 {dimension_numbers = #tpu.dot_dimension_numbers<[1], [1], [0], [0], [0, 0, 1, 0], [], []>} : vector<16x32xf32>, vector<16x32xf32>, vector<16x16xf32> -> vector<16x16xf32>
    %cst_31 = arith.constant 0.176776692 : f32
    %84 = vector.broadcast %cst_31 : f32 to vector<16x16xf32>
    %85 = arith.mulf %83, %84 : vector<16x16xf32>
    %cst_32 = arith.constant dense<0xFF800000> : vector<16xf32>
    %86 = vector.multi_reduction <maximumf>, %85, %cst_32 [1] : vector<16x16xf32> to vector<16xf32>
    %87 = vector.shape_cast %86 : vector<16xf32> to vector<16x1xf32>
    %88 = vector.broadcast %87 : vector<16x1xf32> to vector<16x16xf32>
    %89 = arith.subf %85, %88 : vector<16x16xf32>
    %90 = math.exp %89 : vector<16x16xf32>
    %cst_33 = arith.constant dense<0.000000e+00> : vector<16xf32>
    %91 = vector.multi_reduction <add>, %90, %cst_33 [1] : vector<16x16xf32> to vector<16xf32>
    %92 = vector.shape_cast %91 : vector<16xf32> to vector<16x1xf32>
    %93 = tpu.reciprocal %92 {approx = true} : vector<16x1xf32> -> vector<16x1xf32>
    %94 = vector.broadcast %93 : vector<16x1xf32> to vector<16x16xf32>
    %95 = arith.mulf %90, %94 : vector<16x16xf32>
    %cst_34 = arith.constant dense<0.000000e+00> : vector<16x32xf32>
    %96 = tpu.matmul %95, %82, %cst_34 {dimension_numbers = #tpu.dot_dimension_numbers<[1], [0], [0], [1], [0, 0, 1, 1], [], []>} : vector<16x16xf32>, vector<16x32xf32>, vector<16x32xf32> -> vector<16x32xf32>
    %97 = tpu.concatenate %45, %62, %79, %96 in 1 : vector<16x32xf32>, vector<16x32xf32>, vector<16x32xf32>, vector<16x32xf32> -> vector<16x128xf32>
    %c0_35 = arith.constant 0 : index
    %c0_36 = arith.constant 0 : index
    %98 = vector.load %arg6[%c0_35, %c0_36] : memref<128x128xf32, #tpu.memory_space<vmem>>, vector<128x128xf32>
    %cst_37 = arith.constant dense<0.000000e+00> : vector<16x128xf32>
    %99 = tpu.matmul %97, %98, %cst_37 {dimension_numbers = #tpu.dot_dimension_numbers<[1], [0], [0], [1], [0, 0, 1, 1], [], []>} : vector<16x128xf32>, vector<128x128xf32>, vector<16x128xf32> -> vector<16x128xf32>
    %c0_38 = arith.constant 0 : index
    %c0_39 = arith.constant 0 : index
    %100 = vector.load %arg7[%c0_38, %c0_39] : memref<1x128xf32, #tpu.memory_space<vmem>>, vector<1x128xf32>
    %101 = vector.broadcast %100 : vector<1x128xf32> to vector<16x128xf32>
    %102 = arith.addf %99, %101 : vector<16x128xf32>
    %103 = arith.addf %102, %1 : vector<16x128xf32>
    %c0_40 = arith.constant 0 : index
    %c0_41 = arith.constant 0 : index
    %104 = vector.load %arg8[%c0_40, %c0_41] : memref<1x128xf32, #tpu.memory_space<vmem>>, vector<1x128xf32>
    %c0_42 = arith.constant 0 : index
    %c0_43 = arith.constant 0 : index
    %105 = vector.load %arg9[%c0_42, %c0_43] : memref<1x128xf32, #tpu.memory_space<vmem>>, vector<1x128xf32>
    %cst_44 = arith.constant dense<0.000000e+00> : vector<16xf32>
    %106 = vector.multi_reduction <add>, %103, %cst_44 [1] : vector<16x128xf32> to vector<16xf32>
    %107 = vector.shape_cast %106 : vector<16xf32> to vector<16x1xf32>
    %cst_45 = arith.constant 1.280000e+02 : f32
    %108 = vector.broadcast %cst_45 : f32 to vector<16x1xf32>
    %109 = arith.divf %107, %108 : vector<16x1xf32>
    %110 = vector.broadcast %109 : vector<16x1xf32> to vector<16x128xf32>
    %111 = arith.subf %103, %110 : vector<16x128xf32>
    %112 = arith.mulf %111, %111 : vector<16x128xf32>
    %cst_46 = arith.constant dense<0.000000e+00> : vector<16xf32>
    %113 = vector.multi_reduction <add>, %112, %cst_46 [1] : vector<16x128xf32> to vector<16xf32>
    %114 = vector.shape_cast %113 : vector<16xf32> to vector<16x1xf32>
    %cst_47 = arith.constant 1.280000e+02 : f32
    %115 = vector.broadcast %cst_47 : f32 to vector<16x1xf32>
    %116 = arith.divf %114, %115 : vector<16x1xf32>
    %cst_48 = arith.constant 9.99999974E-6 : f32
    %117 = vector.broadcast %cst_48 : f32 to vector<16x1xf32>
    %118 = arith.addf %116, %117 : vector<16x1xf32>
    %119 = math.rsqrt %118 : vector<16x1xf32>
    %120 = vector.broadcast %119 : vector<16x1xf32> to vector<16x128xf32>
    %121 = arith.mulf %111, %120 : vector<16x128xf32>
    %122 = vector.broadcast %104 : vector<1x128xf32> to vector<16x128xf32>
    %123 = arith.mulf %121, %122 : vector<16x128xf32>
    %124 = vector.broadcast %105 : vector<1x128xf32> to vector<16x128xf32>
    %125 = arith.addf %123, %124 : vector<16x128xf32>
    %c0_49 = arith.constant 0 : index
    %c0_50 = arith.constant 0 : index
    %126 = vector.load %arg10[%c0_49, %c0_50] : memref<128x256xf32, #tpu.memory_space<vmem>>, vector<128x256xf32>
    %cst_51 = arith.constant dense<0.000000e+00> : vector<16x256xf32>
    %127 = tpu.matmul %125, %126, %cst_51 {dimension_numbers = #tpu.dot_dimension_numbers<[1], [0], [0], [1], [0, 0, 1, 1], [], []>} : vector<16x128xf32>, vector<128x256xf32>, vector<16x256xf32> -> vector<16x256xf32>
    %c0_52 = arith.constant 0 : index
    %c0_53 = arith.constant 0 : index
    %128 = vector.load %arg11[%c0_52, %c0_53] : memref<1x256xf32, #tpu.memory_space<vmem>>, vector<1x256xf32>
    %129 = vector.broadcast %128 : vector<1x256xf32> to vector<16x256xf32>
    %130 = arith.addf %127, %129 : vector<16x256xf32>
    %131 = arith.mulf %130, %130 : vector<16x256xf32>
    %132 = arith.mulf %130, %131 : vector<16x256xf32>
    %cst_54 = arith.constant 4.471500e-02 : f32
    %133 = vector.broadcast %cst_54 : f32 to vector<16x256xf32>
    %134 = arith.mulf %133, %132 : vector<16x256xf32>
    %135 = arith.addf %130, %134 : vector<16x256xf32>
    %cst_55 = arith.constant 0.797884583 : f32
    %136 = vector.broadcast %cst_55 : f32 to vector<16x256xf32>
    %137 = arith.mulf %136, %135 : vector<16x256xf32>
    %138 = math.tanh %137 : vector<16x256xf32>
    %cst_56 = arith.constant 1.000000e+00 : f32
    %139 = vector.broadcast %cst_56 : f32 to vector<16x256xf32>
    %140 = arith.addf %139, %138 : vector<16x256xf32>
    %cst_57 = arith.constant 5.000000e-01 : f32
    %141 = vector.broadcast %cst_57 : f32 to vector<16x256xf32>
    %142 = arith.mulf %141, %140 : vector<16x256xf32>
    %143 = arith.mulf %130, %142 : vector<16x256xf32>
    %c0_58 = arith.constant 0 : index
    %c0_59 = arith.constant 0 : index
    %144 = vector.load %arg12[%c0_58, %c0_59] : memref<256x128xf32, #tpu.memory_space<vmem>>, vector<256x128xf32>
    %cst_60 = arith.constant dense<0.000000e+00> : vector<16x128xf32>
    %145 = tpu.matmul %143, %144, %cst_60 {dimension_numbers = #tpu.dot_dimension_numbers<[1], [0], [0], [1], [0, 0, 1, 1], [], []>} : vector<16x256xf32>, vector<256x128xf32>, vector<16x128xf32> -> vector<16x128xf32>
    %c0_61 = arith.constant 0 : index
    %c0_62 = arith.constant 0 : index
    %146 = vector.load %arg13[%c0_61, %c0_62] : memref<1x128xf32, #tpu.memory_space<vmem>>, vector<1x128xf32>
    %147 = vector.broadcast %146 : vector<1x128xf32> to vector<16x128xf32>
    %148 = arith.addf %145, %147 : vector<16x128xf32>
    %149 = arith.addf %148, %103 : vector<16x128xf32>
    %c0_63 = arith.constant 0 : index
    %c0_64 = arith.constant 0 : index
    %c0_65 = arith.constant 0 : index
    %150 = vector.load %arg14[%c0_63, %c0_64, %c0_65] : memref<1x16x128xf32, #tpu.memory_space<vmem>>, vector<1x16x128xf32>
    %151 = vector.shape_cast %150 : vector<1x16x128xf32> to vector<16x128xf32>
    %152 = vector.shape_cast %149 : vector<16x128xf32> to vector<1x16x128xf32>
    tpu.vector_store %arg14[%c0_63, %c0_64, %c0_65], %152 {strides = array<i32>} : memref<1x16x128xf32, #tpu.memory_space<vmem>>, vector<1x16x128xf32>,
    return
  }
  func.func @transform_0(%arg0: i32) -> (i32, i32, i32) {
    %c0_i32 = arith.constant 0 : i32
    %c0_i32_0 = arith.constant 0 : i32
    %c0_i32_1 = arith.constant 0 : i32
    return %arg0, %c0_i32, %c0_i32_0 : i32, i32, i32
  }
  func.func @transform_1(%arg0: i32) -> (i32, i32) {
    %c0_i32 = arith.constant 0 : i32
    %c0_i32_0 = arith.constant 0 : i32
    %c0_i32_1 = arith.constant 0 : i32
    return %c0_i32, %c0_i32_0 : i32, i32
  }
  func.func @transform_2(%arg0: i32) -> (i32, i32) {
    %c0_i32 = arith.constant 0 : i32
    %c0_i32_0 = arith.constant 0 : i32
    %c0_i32_1 = arith.constant 0 : i32
    return %c0_i32, %c0_i32_0 : i32, i32
  }
  func.func @transform_3(%arg0: i32) -> (i32, i32) {
    %c0_i32 = arith.constant 0 : i32
    %c0_i32_0 = arith.constant 0 : i32
    %c0_i32_1 = arith.constant 0 : i32
    return %c0_i32, %c0_i32_0 : i32, i32
  }
  func.func @transform_4(%arg0: i32) -> (i32, i32) {
    %c0_i32 = arith.constant 0 : i32
    %c0_i32_0 = arith.constant 0 : i32
    %c0_i32_1 = arith.constant 0 : i32
    return %c0_i32, %c0_i32_0 : i32, i32
  }
  func.func @transform_5(%arg0: i32) -> (i32, i32) {
    %c0_i32 = arith.constant 0 : i32
    %c0_i32_0 = arith.constant 0 : i32
    %c0_i32_1 = arith.constant 0 : i32
    return %c0_i32, %c0_i32_0 : i32, i32
  }
  func.func @transform_6(%arg0: i32) -> (i32, i32) {
    %c0_i32 = arith.constant 0 : i32
    %c0_i32_0 = arith.constant 0 : i32
    %c0_i32_1 = arith.constant 0 : i32
    return %c0_i32, %c0_i32_0 : i32, i32
  }
  func.func @transform_7(%arg0: i32) -> (i32, i32) {
    %c0_i32 = arith.constant 0 : i32
    %c0_i32_0 = arith.constant 0 : i32
    %c0_i32_1 = arith.constant 0 : i32
    return %c0_i32, %c0_i32_0 : i32, i32
  }
  func.func @transform_8(%arg0: i32) -> (i32, i32) {
    %c0_i32 = arith.constant 0 : i32
    %c0_i32_0 = arith.constant 0 : i32
    %c0_i32_1 = arith.constant 0 : i32
    return %c0_i32, %c0_i32_0 : i32, i32
  }
  func.func @transform_9(%arg0: i32) -> (i32, i32) {
    %c0_i32 = arith.constant 0 : i32
    %c0_i32_0 = arith.constant 0 : i32
    %c0_i32_1 = arith.constant 0 : i32
    return %c0_i32, %c0_i32_0 : i32, i32
  }
  func.func @transform_10(%arg0: i32) -> (i32, i32) {
    %c0_i32 = arith.constant 0 : i32
    %c0_i32_0 = arith.constant 0 : i32
    %c0_i32_1 = arith.constant 0 : i32
    return %c0_i32, %c0_i32_0 : i32, i32
  }
  func.func @transform_11(%arg0: i32) -> (i32, i32) {
    %c0_i32 = arith.constant 0 : i32
    %c0_i32_0 = arith.constant 0 : i32
    %c0_i32_1 = arith.constant 0 : i32
    return %c0_i32, %c0_i32_0 : i32, i32
  }
  func.func @transform_12(%arg0: i32) -> (i32, i32) {
    %c0_i32 = arith.constant 0 : i32
    %c0_i32_0 = arith.constant 0 : i32
    %c0_i32_1 = arith.constant 0 : i32
    return %c0_i32, %c0_i32_0 : i32, i32
  }
  func.func @transform_13(%arg0: i32) -> (i32, i32, i32) {
    %c0_i32 = arith.constant 0 : i32
    %c0_i32_0 = arith.constant 0 : i32
    %c0_i32_1 = arith.constant 0 : i32
    return %arg0, %c0_i32, %c0_i32_0 : i32, i32, i32
  }
}

</mosaic_0001>

<bundles_post_ra>
// kernel: tpu_custom_call.1
= control target key start
LH: loop header
LB: loop body
LE: loop exit
PB: predicated region body
PF: predicated region fallthrough
CT: control target
= control target key end

     0   :  { %s4273_s0 = inlined_call_operand.hbm [shape: f32[2,16,128], index: 0, kind: input, shape index: {}]   ;;  %s4274_s1 = inlined_call_operand.hbm [shape: f32[1,128], index: 1, kind: input, shape index: {}]   ;;  %s4275_s2 = inlined_call_operand.hbm [shape: f32[1,128], index: 2, kind: input, shape index: {}]   ;;  %s4276_s3 = inlined_call_operand.hbm [shape: f32[128,384], index: 3, kind: input, shape index: {}]   ;;  %s4277_s4 = inlined_call_operand.hbm [shape: f32[1,384], index: 4, kind: input, shape index: {}]   ;;  %s4278_s5 = inlined_call_operand.hbm [shape: f32[128,128], index: 5, kind: input, shape index: {}]   ;;  %s4279_s6 = inlined_call_operand.hbm [shape: f32[1,128], index: 6, kind: input, shape index: {}]   ;;  %s4280_s7 = inlined_call_operand.hbm [shape: f32[1,128], index: 7, kind: input, shape index: {}]   ;;  %s4281_s8 = inlined_call_operand.hbm [shape: f32[1,128], index: 8, kind: input, shape index: {}]   ;;  %s4282_s9 = inlined_call_operand.hbm [shape: f32[128,256], index: 9, kind: input, shape index: {}]   ;;  %s4283_s10 = inlined_call_operand.hbm [shape: f32[1,256], index: 10, kind: input, shape index: {}]   ;;  %s4284_s11 = inlined_call_operand.hbm [shape: f32[256,128], index: 11, kind: input, shape index: {}]   ;;  %s4285_s12 = inlined_call_operand.hbm [shape: f32[1,128], index: 12, kind: input, shape index: {}]   ;;  %s4286_s13 = inlined_call_operand.hbm [shape: f32[2,16,128], index: 13, kind: output, shape index: {}]  }
   0x1   :  { %4300 = sst [smem:[#allocation35_spill]] %s4273_s0 }
   0x2   :  { %4301 = sst [smem:[#allocation36_spill]] %s4274_s1 }
   0x3   :  { %4302 = sst [smem:[#allocation37_spill]] %s4275_s2 }
   0x4   :  { %4303 = sst [smem:[#allocation38_spill]] %s4276_s3 }
   0x5   :  { %4304 = sst [smem:[#allocation39_spill]] %s4286_s13 }
   0x6   :  { %18 = vsyncpa [#allocation3], 0 }
   0x7   :  { %20 = vsyncpa [#allocation3 + $0x1], 0 }
   0x8   :  { %21 = vsyncpa [#allocation6], 0 }
   0x9   :  { %22 = vsyncpa [#allocation9], 0 }
   0xa   :  { %23 = vsyncpa [#allocation12], 0 }
   0xb   :  { %24 = vsyncpa [#allocation15], 0 }
   0xc   :  { %25 = vsyncpa [#allocation18], 0 }
   0xd   :  { %26 = vsyncpa [#allocation21], 0 }
   0xe   :  { %27 = vsyncpa [#allocation4], 0 }
   0xf   :  { %29 = vsyncpa [#allocation4 + $0x1], 0  ;;  %s3655_s25 = smov 0   ;;  %s3657_s26 = smov 0  }
  0x10   :  { %s3659_s27 = smov 0   ;;  %s3661_s28 = smov 0  }
  0x11 LB: > { %4305 = sst [smem:[#allocation32_spill]] %s3545_s25  ;;  %s3559_s29 = smov [#allocation5]   ;;  %s3557_s28 = sphi %s3661_s28, %s4350_s28   ;;  %s3553_s27 = sphi %s3659_s27, %s4349_s27   ;;  %s3549_s26 = sphi %s3657_s26, %s4348_s26   ;;  %s3545_s25 = sphi %s3655_s25, %s4347_s25  }
  0x12   : > { %s357_s30 = sshll.u32 %s3559_s29, 4  ;;  %s3676_s14 = sadd.s32 4294967295, %s3557_s28   ;;  %s3681_s30 = int_to_ptr.vmem [resolvable:$true] %s357_s30 }
  0x13   : > { %4306 = sst [smem:[#allocation33_spill]] %s3676_s14  ;;  %p2328_p0 = scmp.ge.s32.totalorder %s3557_s28, 1 }
  0x14   : > { %p4293_p1 = scmp.eq.s32.totalorder %s3676_s14, 0  ;;  %p344_p2 = scmp.lt.s32.totalorder %s3557_s28, 3 }
  0x15   : > { %s3560_s16 = smov [#allocation8]   ;;  %s3561_s19 = smov [#allocation11]  }
  0x16   : > { %p3683_p3 = pnand %p2328_p0, %p344_p2  ;;  %s378_s17 = sshll.u32 %s3560_s16, 4  ;;  %s3690_s17 = int_to_ptr.vmem [resolvable:$true] %s378_s17 }
  0x17   : > { %s402_s20 = sshll.u32 %s3561_s19, 4  ;;  %s4310_s1 = sld [smem:[#allocation36_spill]]  ;;  %s3698_s20 = int_to_ptr.vmem [resolvable:$true] %s402_s20 }
  0x18   : > { %s4307_s15 = scalar_select %p3683_p3, 1, 0 }
  0x19   : > { %p2881_p5 = pneg %p3683_p3 }
  0x1a   : > { %4308 = sst [smem:[#allocation34_spill]] %s4307_s15 }
  0x1b   : > { %p3694_p6 = pnand %p2881_p5, %p4293_p1 }
  0x1d   : > { %s3101_s23 = scalar_lea.hbm %s4310_s1, 16  ;;  %p3708_p8 = pneg %p3694_p6 }
  0x1e   : > { %p3102_p7 = scmp.ne.s32.totalorder %s4310_s1, %s3101_s23  ;;  %p3108_p11 = scmp.lt.u32.totalorder %s3101_s23, %s4310_s1 }
  0x20   : > { %p3104_p9 = pnand %p3708_p8, %p3102_p7 }
  0x22   : > { %p3105_p10 = pneg %p3104_p9 }
  0x24   : > { %p3110_p12 = pnand %p3108_p11, %p3105_p10 }
  0x26   : > { %3113 = shalt.err (!%p3110_p12)
}
  0x27   : > { %s3114_s21 = scalar_lea.vmem %s3681_s30, 16  ;;  %s3121_s22 = scalar_lea.vmem %s3681_s30, 32 }
  0x28   : > { %p3115_p13 = scmp.ne.s32.totalorder %s3681_s30, %s3114_s21  ;;  %p3122_p5 = scmp.lt.s32.totalorder %s3681_s30, %s3681_s30 }
  0x29   : > { %p3123_p7 = scmp.lt.s32.totalorder %s3121_s22, %s3114_s21 }
  0x2a   : > { %p3117_p0 = pnand %p3115_p13, %p3708_p8 }
  0x2b   : > { %p3124_p9 = por %p3123_p7, %p3122_p5 }
  0x2c   : > { %p3118_p2 = pneg %p3117_p0 }
  0x2e   : > { %p3125_p4 = pnand %p3124_p9, %p3118_p2 }
  0x30   : > { %3128 = shalt.err (!%p3125_p4)
}
  0x31   : > { %2884 = dma.hbm_to_vmem [thread:$0]  (!%p3694_p6), %s4310_s1, 16, %s3681_s30, [#allocation6]  }
  0x32   : > { %s4312_s3 = sld [smem:[#allocation38_spill]] }
  0x38   : > { %s3129_s19 = scalar_lea.hbm %s4312_s3, 6144 }
  0x39   : > { %p3130_p10 = scmp.ne.s32.totalorder %s4312_s3, %s3129_s19  ;;  %p3136_p4 = scmp.lt.u32.totalorder %s3129_s19, %s4312_s3 }
  0x3b   : > { %p3132_p11 = pnand %p3130_p10, %p3708_p8 }
  0x3d   : > { %p3133_p12 = pneg %p3132_p11 }
  0x3f   : > { %p3138_p13 = pnand %p3136_p4, %p3133_p12 }
  0x41   : > { %3141 = shalt.err (!%p3138_p13)
}
  0x42   : > { %s3142_s30 = scalar_lea.vmem %s3690_s17, 6144  ;;  %p3150_p7 = scmp.lt.s32.totalorder %s3690_s17, %s3690_s17 }
  0x43   : > { %p3143_p0 = scmp.ne.s32.totalorder %s3690_s17, %s3142_s30  ;;  %p3151_p9 = scmp.lt.s32.totalorder %s3142_s30, %s3142_s30 }
  0x45   : > { %p3145_p2 = pnand %p3143_p0, %p3708_p8  ;;  %p3152_p10 = por %p3151_p9, %p3150_p7 }
  0x47   : > { %p3146_p5 = pneg %p3145_p2 }
  0x49   : > { %p3153_p11 = pnand %p3152_p10, %p3146_p5 }
  0x4b   : > { %3156 = shalt.err (!%p3153_p11)
}
  0x4c   : > { %s3562_s0 = smov 384   ;;  %s3563_s15 = smov 24  }
  0x4d   : > { %2890 = dma.hbm_to_vmem [thread:$0]  (!%p3694_p6), %s4312_s3, 6144, %s3690_s17, [#allocation9], %s3562_s0, %s3562_s0, %s3563_s15  }
  0x4e   : > { %s3157_s19 = scalar_lea.hbm %s4278_s5, 2048 }
  0x4f   : > { %p3158_p12 = scmp.ne.s32.totalorder %s4278_s5, %s3157_s19  ;;  %p3164_p0 = scmp.lt.u32.totalorder %s3157_s19, %s4278_s5 }
  0x51   : > { %p3160_p4 = pnand %p3158_p12, %p3708_p8 }
  0x53   : > { %p3161_p13 = pneg %p3160_p4 }
  0x55   : > { %p3166_p2 = pnand %p3164_p0, %p3161_p13 }
  0x57   : > { %3169 = shalt.err (!%p3166_p2)
}
  0x58   : > { %s3170_s17 = scalar_lea.vmem %s3698_s20, 2048  ;;  %p3178_p10 = scmp.lt.s32.totalorder %s3698_s20, %s3698_s20 }
  0x59   : > { %p3171_p5 = scmp.ne.s32.totalorder %s3698_s20, %s3170_s17  ;;  %p3179_p11 = scmp.lt.s32.totalorder %s3170_s17, %s3170_s17 }
  0x5b   : > { %p3173_p7 = pnand %p3171_p5, %p3708_p8  ;;  %p3180_p12 = por %p3179_p11, %p3178_p10 }
  0x5d   : > { %p3174_p9 = pneg %p3173_p7 }
  0x5f   : > { %p3181_p4 = pnand %p3180_p12, %p3174_p9 }
  0x61   : > { %3184 = shalt.err (!%p3181_p4)
}
  0x62   : > { %s4295_s0 = smov 128   ;;  %s4297_s1 = smov 8  }
  0x63   : > { %2896 = dma.hbm_to_vmem [thread:$0]  (!%p3694_p6), %s4278_s5, 2048, %s3698_s20, [#allocation12], %s4295_s0, %s4295_s0, %s4297_s1  }
  0x64   : > { %s3566_s23 = smov [#allocation14]   ;;  %s3567_s29 = smov [#allocation17]  }
  0x65   : > { %s427_s24 = sshll.u32 %s3566_s23, 4  ;;  %s448_s19 = sshll.u32 %s3567_s29, 4  ;;  %s428_s24 = int_to_ptr.vmem [resolvable:$true] %s427_s24  ;;  %s449_s19 = int_to_ptr.vmem [resolvable:$true] %s448_s19 }
  0x66   : > { %s3185_s30 = scalar_lea.hbm %s4280_s7, 16 }
  0x67   : > { %p3186_p13 = scmp.ne.s32.totalorder %s4280_s7, %s3185_s30  ;;  %p3192_p5 = scmp.lt.u32.totalorder %s3185_s30, %s4280_s7 }
  0x69   : > { %p3188_p0 = pnand %p3186_p13, %p3708_p8 }
  0x6b   : > { %p3189_p2 = pneg %p3188_p0 }
  0x6d   : > { %p3194_p7 = pnand %p3192_p5, %p3189_p2 }
  0x6f   : > { %3197 = shalt.err (!%p3194_p7)
}
  0x70   : > { %s3198_s20 = scalar_lea.vmem %s428_s24, 16  ;;  %s3205_s15 = scalar_lea.vmem %s428_s24, 32 }
  0x71   : > { %p3199_p9 = scmp.ne.s32.totalorder %s428_s24, %s3198_s20  ;;  %p3206_p12 = scmp.lt.s32.totalorder %s428_s24, %s428_s24 }
  0x72   : > { %p3207_p4 = scmp.lt.s32.totalorder %s3205_s15, %s3198_s20 }
  0x73   : > { %p3201_p10 = pnand %p3199_p9, %p3708_p8 }
  0x74   : > { %p3208_p1 = por %p3207_p4, %p3206_p12 }
  0x75   : > { %p3202_p11 = pneg %p3201_p10 }
  0x77   : > { %p3209_p3 = pnand %p3208_p1, %p3202_p11 }
  0x79   : > { %3212 = shalt.err (!%p3209_p3)
}
  0x7a   : > { %2902 = dma.hbm_to_vmem [thread:$0]  (!%p3694_p6), %s4280_s7, 16, %s428_s24, [#allocation15]  }
  0x7b   : > { %s3213_s23 = scalar_lea.hbm %s4282_s9, 4096 }
  0x7c   : > { %p3214_p13 = scmp.ne.s32.totalorder %s4282_s9, %s3213_s23  ;;  %p3220_p3 = scmp.lt.u32.totalorder %s3213_s23, %s4282_s9 }
  0x7e   : > { %p3216_p0 = pnand %p3214_p13, %p3708_p8 }
  0x80   : > { %p3217_p1 = pneg %p3216_p0 }
  0x82   : > { %p3222_p2 = pnand %p3220_p3, %p3217_p1 }
  0x84   : > { %3225 = shalt.err (!%p3222_p2)
}
  0x85   : > { %s3226_s17 = scalar_lea.vmem %s449_s19, 4096  ;;  %p3234_p10 = scmp.lt.s32.totalorder %s449_s19, %s449_s19 }
  0x86   : > { %p3227_p5 = scmp.ne.s32.totalorder %s449_s19, %s3226_s17  ;;  %p3235_p11 = scmp.lt.s32.totalorder %s3226_s17, %s3226_s17 }
  0x88   : > { %p3229_p7 = pnand %p3227_p5, %p3708_p8  ;;  %p3236_p12 = por %p3235_p11, %p3234_p10 }
  0x8a   : > { %p3230_p9 = pneg %p3229_p7 }
  0x8c   : > { %p3237_p4 = pnand %p3236_p12, %p3230_p9 }
  0x8e   : > { %3240 = shalt.err (!%p3237_p4)
}
  0x8f   : > { %s3568_s24 = smov 256   ;;  %s3569_s20 = smov 16  }
  0x90   : > { %2908 = dma.hbm_to_vmem [thread:$0]  (!%p3694_p6), %s4282_s9, 4096, %s449_s19, [#allocation18], %s3568_s24, %s3568_s24, %s3569_s20  }
  0x91   : > { %s3570_s13 = smov [#allocation20]   ;;  %s3571_s14 = smov [#allocation7]  }
  0x92   : > { %s472_s25 = sshll.u32 %s3570_s13, 4  ;;  %s368_s23 = sshll.u32 %s3571_s14, 4  ;;  %s473_s25 = int_to_ptr.vmem [resolvable:$true] %s472_s25  ;;  %s369_s23 = int_to_ptr.vmem [resolvable:$true] %s368_s23 }
  0x93   : > { %s3241_s22 = scalar_lea.hbm %s4284_s11, 4096 }
  0x94   : > { %p3242_p13 = scmp.ne.s32.totalorder %s4284_s11, %s3241_s22  ;;  %p3248_p3 = scmp.lt.u32.totalorder %s3241_s22, %s4284_s11 }
  0x96   : > { %p3244_p0 = pnand %p3242_p13, %p3708_p8 }
  0x98   : > { %p3245_p1 = pneg %p3244_p0 }
  0x9a   : > { %p3250_p2 = pnand %p3248_p3, %p3245_p1 }
  0x9c   : > { %3253 = shalt.err (!%p3250_p2)
}
  0x9d   : > { %s3254_s19 = scalar_lea.vmem %s473_s25, 4096  ;;  %p3262_p10 = scmp.lt.s32.totalorder %s473_s25, %s473_s25 }
  0x9e   : > { %p3255_p5 = scmp.ne.s32.totalorder %s473_s25, %s3254_s19  ;;  %p3263_p11 = scmp.lt.s32.totalorder %s3254_s19, %s3254_s19 }
  0xa0   : > { %p3257_p7 = pnand %p3255_p5, %p3708_p8  ;;  %p3264_p12 = por %p3263_p11, %p3262_p10 }
  0xa2   : > { %p3258_p9 = pneg %p3257_p7 }
  0xa4   : > { %p3265_p4 = pnand %p3264_p12, %p3258_p9 }
  0xa6   : > { %3268 = shalt.err (!%p3265_p4)
}
  0xa7   : > { %s4313_s24 = smov 8   ;;  %s4314_s20 = smov 128  }
  0xa8   : > { %2914 = dma.hbm_to_vmem [thread:$0]  (!%p3694_p6), %s4284_s11, 4096, %s473_s25, [#allocation21], %s4314_s20, %s4314_s20, %s4313_s24  }
  0xa9   : > { %s4315_s2 = sld [smem:[#allocation37_spill]] }
  0xaf   : > { %s3269_s13 = scalar_lea.hbm %s4315_s2, 16 }
  0xb0   : > { %p3270_p13 = scmp.ne.s32.totalorder %s4315_s2, %s3269_s13  ;;  %p3276_p3 = scmp.lt.u32.totalorder %s3269_s13, %s4315_s2 }
  0xb2   : > { %p3272_p0 = pnand %p3270_p13, %p3708_p8 }
  0xb4   : > { %p3273_p1 = pneg %p3272_p0 }
  0xb6   : > { %p3278_p2 = pnand %p3276_p3, %p3273_p1 }
  0xb8   : > { %3281 = shalt.err (!%p3278_p2)
}
  0xb9   : > { %s3282_s30 = scalar_lea.vmem %s369_s23, 16  ;;  %s3289_s25 = scalar_lea.vmem %s369_s23, 32 }
  0xba   : > { %p3283_p5 = scmp.ne.s32.totalorder %s369_s23, %s3282_s30  ;;  %p3290_p10 = scmp.lt.s32.totalorder %s369_s23, %s369_s23 }
  0xbb   : > { %p3291_p11 = scmp.lt.s32.totalorder %s3289_s25, %s3282_s30 }
  0xbc   : > { %p3285_p7 = pnand %p3283_p5, %p3708_p8 }
  0xbd   : > { %p3292_p12 = por %p3291_p11, %p3290_p10 }
  0xbe   : > { %p3286_p9 = pneg %p3285_p7 }
  0xc0   : > { %p3293_p4 = pnand %p3292_p12, %p3286_p9 }
  0xc2   : > { %3296 = shalt.err (!%p3293_p4)
}
  0xc3   : > { %2887 = dma.hbm_to_vmem [thread:$0]  (!%p3694_p6), %s4315_s2, 16, %s369_s23, [#allocation6]  }
  0xc4   : > { %s3572_s0 = smov [#allocation10]   ;;  %s3573_s15 = smov [#allocation13]  }
  0xc5   : > { %s392_s1 = sshll.u32 %s3572_s0, 4  ;;  %s416_s3 = sshll.u32 %s3573_s15, 4  ;;  %s393_s1 = int_to_ptr.vmem [resolvable:$true] %s392_s1  ;;  %s417_s3 = int_to_ptr.vmem [resolvable:$true] %s416_s3 }
  0xc6   : > { %s3297_s29 = scalar_lea.hbm %s4277_s4, 48 }
  0xc7   : > { %p3298_p13 = scmp.ne.s32.totalorder %s4277_s4, %s3297_s29  ;;  %p3304_p3 = scmp.lt.u32.totalorder %s3297_s29, %s4277_s4 }
  0xc9   : > { %p3300_p0 = pnand %p3298_p13, %p3708_p8 }
  0xcb   : > { %p3301_p1 = pneg %p3300_p0 }
  0xcd   : > { %p3306_p2 = pnand %p3304_p3, %p3301_p1 }
  0xcf   : > { %3309 = shalt.err (!%p3306_p2)
}
  0xd0   : > { %s3310_s23 = scalar_lea.vmem %s393_s1, 48  ;;  %s3317_s17 = scalar_lea.vmem %s393_s1, 64 }
  0xd1   : > { %p3311_p5 = scmp.ne.s32.totalorder %s393_s1, %s3310_s23  ;;  %p3318_p10 = scmp.lt.s32.totalorder %s393_s1, %s393_s1 }
  0xd2   : > { %p3319_p11 = scmp.lt.s32.totalorder %s3317_s17, %s3310_s23 }
  0xd3   : > { %p3313_p7 = pnand %p3311_p5, %p3708_p8 }
  0xd4   : > { %p3320_p12 = por %p3319_p11, %p3318_p10 }
  0xd5   : > { %p3314_p9 = pneg %p3313_p7 }
  0xd7   : > { %p3321_p4 = pnand %p3320_p12, %p3314_p9 }
  0xd9   : > { %3324 = shalt.err (!%p3321_p4)
}
  0xda   : > { %2893 = dma.hbm_to_vmem [thread:$0]  (!%p3694_p6), %s4277_s4, 48, %s393_s1, [#allocation9]  }
  0xdb   : > { %s3325_s14 = scalar_lea.hbm %s4279_s6, 16 }
  0xdc   : > { %p3326_p13 = scmp.ne.s32.totalorder %s4279_s6, %s3325_s14  ;;  %p3332_p3 = scmp.lt.u32.totalorder %s3325_s14, %s4279_s6 }
  0xde   : > { %p3328_p0 = pnand %p3326_p13, %p3708_p8 }
  0xe0   : > { %p3329_p1 = pneg %p3328_p0 }
  0xe2   : > { %p3334_p2 = pnand %p3332_p3, %p3329_p1 }
  0xe4   : > { %3337 = shalt.err (!%p3334_p2)
}
  0xe5   : > { %s3338_s25 = scalar_lea.vmem %s417_s3, 16  ;;  %s3345_s1 = scalar_lea.vmem %s417_s3, 32 }
  0xe6   : > { %p3339_p5 = scmp.ne.s32.totalorder %s417_s3, %s3338_s25  ;;  %p3346_p10 = scmp.lt.s32.totalorder %s417_s3, %s417_s3 }
  0xe7   : > { %p3347_p11 = scmp.lt.s32.totalorder %s3345_s1, %s3338_s25 }
  0xe8   : > { %p3341_p7 = pnand %p3339_p5, %p3708_p8 }
  0xe9   : > { %p3348_p12 = por %p3347_p11, %p3346_p10 }
  0xea   : > { %p3342_p9 = pneg %p3341_p7 }
  0xec   : > { %p3349_p4 = pnand %p3348_p12, %p3342_p9 }
  0xee   : > { %3352 = shalt.err (!%p3349_p4)
}
  0xef   : > { %2899 = dma.hbm_to_vmem [thread:$0]  (!%p3694_p6), %s4279_s6, 16, %s417_s3, [#allocation12]  }
  0xf0   : > { %s3574_s19 = smov [#allocation16]   ;;  %s3575_s15 = smov [#allocation19]  }
  0xf1   : > { %s438_s0 = sshll.u32 %s3574_s19, 4  ;;  %s462_s13 = sshll.u32 %s3575_s15, 4  ;;  %s439_s0 = int_to_ptr.vmem [resolvable:$true] %s438_s0  ;;  %s463_s13 = int_to_ptr.vmem [resolvable:$true] %s462_s13 }
  0xf2   : > { %s3353_s21 = scalar_lea.hbm %s4281_s8, 16 }
  0xf3   : > { %p3354_p13 = scmp.ne.s32.totalorder %s4281_s8, %s3353_s21  ;;  %p3360_p3 = scmp.lt.u32.totalorder %s3353_s21, %s4281_s8 }
  0xf5   : > { %p3356_p0 = pnand %p3354_p13, %p3708_p8 }
  0xf7   : > { %p3357_p1 = pneg %p3356_p0 }
  0xf9   : > { %p3362_p2 = pnand %p3360_p3, %p3357_p1 }
  0xfb   : > { %3365 = shalt.err (!%p3362_p2)
}
  0xfc   : > { %s3366_s3 = scalar_lea.vmem %s439_s0, 16  ;;  %s3373_s23 = scalar_lea.vmem %s439_s0, 32 }
  0xfd   : > { %p3367_p5 = scmp.ne.s32.totalorder %s439_s0, %s3366_s3  ;;  %p3374_p10 = scmp.lt.s32.totalorder %s439_s0, %s439_s0 }
  0xfe   : > { %p3375_p11 = scmp.lt.s32.totalorder %s3373_s23, %s3366_s3 }
  0xff   : > { %p3369_p7 = pnand %p3367_p5, %p3708_p8 }
 0x100   : > { %p3376_p12 = por %p3375_p11, %p3374_p10 }
 0x101   : > { %p3370_p9 = pneg %p3369_p7 }
 0x103   : > { %p3377_p4 = pnand %p3376_p12, %p3370_p9 }
 0x105   : > { %3380 = shalt.err (!%p3377_p4)
}
 0x106   : > { %2905 = dma.hbm_to_vmem [thread:$0]  (!%p3694_p6), %s4281_s8, 16, %s439_s0, [#allocation15]  }
 0x107   : > { %s3381_s29 = scalar_lea.hbm %s4283_s10, 32 }
 0x108   : > { %p3382_p13 = scmp.ne.s32.totalorder %s4283_s10, %s3381_s29  ;;  %p3388_p3 = scmp.lt.u32.totalorder %s3381_s29, %s4283_s10 }
 0x10a   : > { %p3384_p0 = pnand %p3382_p13, %p3708_p8 }
 0x10c   : > { %p3385_p1 = pneg %p3384_p0 }
 0x10e   : > { %p3390_p2 = pnand %p3388_p3, %p3385_p1 }
 0x110   : > { %3393 = shalt.err (!%p3390_p2)
}
 0x111   : > { %s3394_s1 = scalar_lea.vmem %s463_s13, 32  ;;  %p3402_p10 = scmp.lt.s32.totalorder %s463_s13, %s463_s13 }
 0x112   : > { %p3395_p5 = scmp.ne.s32.totalorder %s463_s13, %s3394_s1  ;;  %p3403_p11 = scmp.lt.s32.totalorder %s3394_s1, %s3394_s1 }
 0x114   : > { %p3397_p7 = pnand %p3395_p5, %p3708_p8  ;;  %p3404_p12 = por %p3403_p11, %p3402_p10 }
 0x116   : > { %p3398_p9 = pneg %p3397_p7 }
 0x118   : > { %p3405_p4 = pnand %p3404_p12, %p3398_p9 }
 0x11a   : > { %3408 = shalt.err (!%p3405_p4)
}
 0x11b   : > { %2911 = dma.hbm_to_vmem [thread:$0]  (!%p3694_p6), %s4283_s10, 32, %s463_s13, [#allocation18]  }
 0x11c   : > { %s3576_s23 = smov [#allocation22]   ;;  %s3409_s14 = scalar_lea.hbm %s4285_s12, 16 }
 0x11d   : > { %s486_s17 = sshll.u32 %s3576_s23, 4  ;;  %p3410_p13 = scmp.ne.s32.totalorder %s4285_s12, %s3409_s14  ;;  %s487_s17 = int_to_ptr.vmem [resolvable:$true] %s486_s17 }
 0x11e   : > { %p3416_p3 = scmp.lt.u32.totalorder %s3409_s14, %s4285_s12 }
 0x11f   : > { %p3412_p0 = pnand %p3410_p13, %p3708_p8 }
 0x121   : > { %p3413_p1 = pneg %p3412_p0 }
 0x123   : > { %p3418_p2 = pnand %p3416_p3, %p3413_p1 }
 0x125   : > { %3421 = shalt.err (!%p3418_p2)
}
 0x126   : > { %s3422_s13 = scalar_lea.vmem %s487_s17, 16  ;;  %s3429_s25 = scalar_lea.vmem %s487_s17, 32 }
 0x127   : > { %p3423_p5 = scmp.ne.s32.totalorder %s487_s17, %s3422_s13  ;;  %p3430_p10 = scmp.lt.s32.totalorder %s487_s17, %s487_s17 }
 0x128   : > { %p3431_p11 = scmp.lt.s32.totalorder %s3429_s25, %s3422_s13 }
 0x129   : > { %p3425_p7 = pnand %p3423_p5, %p3708_p8 }
 0x12a   : > { %p3432_p12 = por %p3431_p11, %p3430_p10 }
 0x12b   : > { %p3426_p9 = pneg %p3425_p7 }
 0x12d   : > { %p3433_p4 = pnand %p3432_p12, %p3426_p9 }
 0x12f   : > { %3436 = shalt.err (!%p3433_p4)
}
 0x130   : > { %s4316_s16 = sld [smem:[#allocation32_spill]]  ;;  %s4317_s3 = sld [smem:[#allocation33_spill]] }
 0x131   : > { %2917 = dma.hbm_to_vmem [thread:$0]  (!%p3694_p6), %s4285_s12, 16, %s487_s17, [#allocation21]  }
 0x132   : > { %s2327_s23 = sadd.s32 4294967294, %s3557_s28   ;;  %s3946_s18 = sadd.s32 1, %s3557_s28  }
 0x133   : > { %s39_s19 = ssub.s32 %s3557_s28, %s3946_s18  ;;  %s42_s15 = sadd.s32 1, %s3553_s27 }
 0x134   : > { %p40_p8 = scmp.eq.s32.totalorder %s39_s19, 0  ;;  %p49_p13 = scmp.ne.s32.totalorder %s3553_s27, %s3549_s26 }
 0x135   : > { %p50_p0 = scmp.eq.s32.totalorder %s3557_s28, 0  ;;  %p337_p7 = scmp.eq.s32.totalorder %s2327_s23, 1 }
 0x136   : > { %p55_p1 = scmp.ne.s32.totalorder %s3549_s26, %s4316_s16  ;;  %p4319_p2 = scmp.eq.s32.totalorder %s4317_s3, 0 }
 0x137   : > { %s3957_s14 = scalar_select %p40_p8, %s3553_s27, %s42_s15  }
 0x138   : > { %p3959_p3 = por %p50_p0, %p49_p13  ;;  %p3965_p6 = por %p4319_p2, %p55_p1 }
 0x139   : > { %p331_p5 = scmp.eq.s32.totalorder %s4317_s3, 1  ;;  %p2938_p9 = scmp.lt.s32.totalorder %s3557_s28, 2 }
 0x13a   : > { %s497_s21 = sand.u32 1, %s3553_s27   ;;  %p3976_p11 = por %p337_p7, %p55_p1 }
 0x13b   : > { %p3972_p10 = por %p331_p5, %p49_p13  ;;  %s2342_s13 = sshll.u32 %s497_s21, 4 }
 0x13c   : > { %s4322_s30 = scalar_select %p3976_p11, 1, 0 }
 0x13d   : > { %s4321_s22 = scalar_select %p3972_p10, 1, 0 }
 0x13e   : > { %s2395_s25 = sshll.u32 %s3557_s28, 8  ;;  %s4323_s16 = sld [smem:[#allocation35_spill]] }
 0x13f   : > { %s501_s3 = scalar_lea.vmem [#allocation2], %s2342_s13  ;;  %p3990_p12 = pnand %p2938_p9, %p3959_p3 }
 0x140   : > { %s508_s23 = sshll.u32 %s501_s3, 4  ;;  %s3994_s2 = scalar_lea.sflag [#allocation3], %s497_s21  ;;  %s3986_s23 = int_to_ptr.vmem [resolvable:$true] %s508_s23 }
 0x141   : > { %p3439_p8 = pneg %p3990_p12 }
 0x144   : > { %s3984_s19 = scalar_lea.hbm %s4323_s16, %s2395_s25  ;;  %s3442_s29 = scalar_lea.hbm %s4323_s16, 512 }
 0x145   : > { %s3437_s1 = scalar_lea.hbm %s3984_s19, 256  ;;  %p3443_p1 = scmp.lt.u32.totalorder %s3984_s19, %s4323_s16 }
 0x146   : > { %p3438_p4 = scmp.ne.s32.totalorder %s3984_s19, %s3437_s1  ;;  %p3444_p3 = scmp.lt.u32.totalorder %s3442_s29, %s3437_s1 }
 0x147   : > { %p3446_p5 = scmp.lt.u32.totalorder %s3437_s1, %s3984_s19 }
 0x148   : > { %p3440_p13 = pnand %p3439_p8, %p3438_p4  ;;  %p3445_p2 = por %p3444_p3, %p3443_p1 }
 0x14a   : > { %p3441_p0 = pneg %p3440_p13  ;;  %p3447_p7 = por %p3446_p5, %p3445_p2 }
 0x14c   : > { %p3448_p9 = pnand %p3447_p7, %p3441_p0 }
 0x14e   : > { %3451 = shalt.err (!%p3448_p9)
}
 0x14f   : > { %s3452_s21 = scalar_lea.vmem %s3986_s23, 256  ;;  %s3577_s13 = smov [#allocation2]  }
 0x150   : > { %p3453_p4 = scmp.ne.s32.totalorder %s3986_s23, %s3452_s21  ;;  %s3457_s25 = sshll.u32 %s3577_s13, 4  ;;  %s3458_s25 = int_to_ptr.vmem [resolvable:$false] %s3457_s25 }
 0x151   : > { %s3459_s0 = scalar_lea.vmem %s3458_s25, 512  ;;  %p3460_p10 = scmp.lt.s32.totalorder %s3986_s23, %s3458_s25 }
 0x152   : > { %p3455_p13 = pnand %p3453_p4, %p3439_p8  ;;  %p3461_p1 = scmp.lt.s32.totalorder %s3459_s0, %s3452_s21 }
 0x154   : > { %p3456_p11 = pneg %p3455_p13  ;;  %p3462_p3 = por %p3461_p1, %p3460_p10 }
 0x156   : > { %p3463_p2 = pnand %p3462_p3, %p3456_p11 }
 0x158   : > { %3466 = shalt.err (!%p3463_p2)
}
 0x159   : > { %2921 = dma.hbm_to_vmem [thread:$0]  (!%p3990_p12), %s3984_s19, 256, %s3986_s23, %s3994_s2, %s4314_s20, %s4314_s20, %s4313_s24  }
 0x15a   : > { %s4325_s1 = sld [smem:[#allocation34_spill]] }
 0x160   : > { %p4326_p8 = scmp.ne.s32.totalorder %s4325_s1, 0 }
 0x161   : > { %s4028_s29 = sand.u32 (!%p4326_p8), 1, %s3549_s26  }
 0x162   : > { %520 = sbr.rel (%p4326_p8) target bundleno = 3894 (0xf36), region = 72  ;;  %s2346_s3 = sshll.u32 (!%p4326_p8), %s4028_s29, 4 }
 0x163   : > { %s523_s21 = scalar_lea.sflag (!%p4326_p8), [#allocation3], %s4028_s29  ;;  %s526_s15 = scalar_lea.vmem (!%p4326_p8), [#allocation2], %s2346_s3 }
 0x169   : > { %3512 = dma.done.wait (%p3965_p6), %s523_s21, 256  }
 0x16a   : > { %3514 = vsyncadd (%p3965_p6), %s523_s21, 4294967040  ;;  %s4327_s2 = sld [smem:[#allocation33_spill]] }
 0x170   : > { %p4328_p10 = scmp.eq.s32.totalorder %s4327_s2, 0 }
 0x172   : > { %3516 = dma.done.wait (%p4328_p10), [#allocation6], 32   ;;  %p4329_p11 = pmov %p4328_p10 }
 0x173   : > { %p4330_p12 = pmov %p4328_p10 }
 0x174   : > { %3518 = vsyncadd (%p4329_p11), [#allocation6], 4294967264 }
 0x175   : > { %3520 = dma.done.wait (%p4330_p12), [#allocation9], 6192   ;;  %p4331_p0 = pmov %p4328_p10 }
 0x177   : > { %3522 = vsyncadd (%p4331_p0), [#allocation9], 4294961104  ;;  %p4332_p5 = pmov %p4331_p0 }
 0x178   : > { %p4333_p7 = pmov %p4331_p0 }
 0x179   : > { %3524 = dma.done.wait (%p4332_p5), [#allocation12], 2064  }
 0x17a   : > { %3526 = vsyncadd (%p4333_p7), [#allocation12], 4294965232  ;;  %p4334_p6 = pmov %p4331_p0 }
 0x17b   : > { %p4335_p9 = pmov %p4331_p0 }
 0x17c   : > { %3528 = dma.done.wait (%p4334_p6), [#allocation15], 32  }
 0x17d   : > { %3530 = vsyncadd (%p4335_p9), [#allocation15], 4294967264  ;;  %p4336_p4 = pmov %p4331_p0 }
 0x17e   : > { %p4337_p13 = pmov %p4331_p0 }
 0x17f   : > { %3532 = dma.done.wait (%p4336_p4), [#allocation18], 4128  }
 0x180   : > { %3534 = vsyncadd (%p4337_p13), [#allocation18], 4294963168  ;;  %p4338_p1 = pmov %p4331_p0 }
 0x181   : > { %p4339_p3 = pmov %p4331_p0 }
 0x182   : > { %3536 = dma.done.wait (%p4338_p1), [#allocation21], 4112  }
 0x183   : > { %3538 = vsyncadd (%p4339_p3), [#allocation21], 4294963184  ;;  %v4062_v0 = vld [vmem:[%s526_s15] sm:$0xff]  ;;  %v4065_v1 = vld [vmem:[%s526_s15 + $0x8] sm:$0xff]  ;;  %vm877_vm0 = vcmask 261120   ;;  %vm967_vm2 = vcmask 130048  }
 0x184   : > { %621 = vadd.xlane.f32.xlu0 %v4062_v0  ;;  %v661_v2 = vld [vmem:[#allocation8 + $0x8] sm:$0xff]  ;;  %v664_v3 = vld [vmem:[#allocation8 + $0x20] sm:$0xff]  ;;  %v663_v6 = vld [vmem:[#allocation8 + $0x18] sm:$0xff]  ;;  %s3579_s24 = smov 64   ;;  %s3580_s20 = smov 96   ;;  %vm1705_vm3 = vcmask 523264  }
 0x185   : > { %v660_v4 = vld [vmem:[#allocation8] sm:$0xff]  ;;  %v2629_v5 = vpack.c.bf16 %v664_v3, %v661_v2  ;;  %v667_v7 = vld [vmem:[#allocation8 + $0x38] sm:$0xff]  ;;  %v670_v8 = vld [vmem:[#allocation8 + $0x50] sm:$0xff]  ;;  %s3581_s17 = smov 32   ;;  %vm1708_vm4 = vcmask 785408   ;;  %s616_s19 = scalar_lea.vmem [#allocation23], %s2346_s3 }
 0x186   : > { %v2631_v9 = vpack.c.bf16 %v663_v6, %v660_v4  ;;  %v2633_v10 = vpack.c.bf16 %v670_v8, %v667_v7  ;;  %v662_v11 = vld [vmem:[#allocation8 + $0x10] sm:$0xff]  ;;  %v665_v12 = vld [vmem:[#allocation8 + $0x28] sm:$0xff]  ;;  %v676_v17 = vld [vmem:[#allocation8 + $0x80] sm:$0xff]  ;;  %v3578_v6 = vmov 0.0   ;;  %s2140_s23 = sshll.u32 %s616_s19, 4  ;;  %s2396_s13 = sshll.u32 %s4327_s2, 8  ;;  %s4223_s23 = int_to_ptr.vmem [resolvable:$true] %s2140_s23 }
 0x187   : > { %v666_v13 = vld [vmem:[#allocation8 + $0x30] sm:$0xff]  ;;  %2630 = vmatprep.subr.bf16.mxu0 %v2629_v5  ;;  %v2661_v14 = vpack.c.bf16 %v665_v12, %v662_v11  ;;  %v669_v15 = vld [vmem:[#allocation8 + $0x48] sm:$0xff]  ;;  %v668_v19 = vld [vmem:[#allocation8 + $0x40] sm:$0xff]  ;;  %789 = vmatprep.mubr.f32.mxu0 %v3578_v6  ;;  %s4342_s1 = sld [smem:[#allocation39_spill]]  ;;  %s2127_s3 = scalar_lea.sflag [#allocation4], %s4028_s29 }
 0x188   : > { %623 = vadd.xlane.f32.xlu0 %v4065_v1  ;;  %v673_v16 = vld [vmem:[#allocation8 + $0x68] sm:$0xff]  ;;  %2632 = vmatpush1.bf16.msra.mxu0 %v2631_v9  ;;  %v2635_v18 = vpack.c.bf16 %v669_v15, %v666_v13  ;;  %v671_v20 = vld [vmem:[#allocation8 + $0x58] sm:$0xff]  ;;  %v672_v23 = vld [vmem:[#allocation8 + $0x60] sm:$0xff]  ;;  %s3467_s15 = scalar_lea.vmem %s4223_s23, 256  ;;  %p4343_p8 = scmp.ne.s32.totalorder %s4321_s22, 0 }
 0x189   : > { %2634 = vmatprep.subr.bf16.mxu0 %v2633_v10  ;;  %2662 = vmatprep.subr.bf16.mxu1 %v2661_v14  ;;  %v2637_v21 = vpack.c.bf16 %v676_v17, %v673_v16  ;;  %v2665_v22 = vpack.c.bf16 %v671_v20, %v668_v19  ;;  %v675_v24 = vld [vmem:[#allocation8 + $0x78] sm:$0xff]  ;;  %v682_v35 = vld [vmem:[#allocation8 + $0xb0] sm:$0xff]  ;;  %v677_v38 = vld [vmem:[#allocation8 + $0x88] sm:$0xff]  ;;  %p3468_p2 = scmp.ne.s32.totalorder %s4223_s23, %s3467_s15  ;;  %s3582_s2 = smov [#allocation23]  }
 0x18a   : > { %2664 = vmatpush3.bf16.msra.mxu1 %v2661_v14  ;;  %v2639_v25 = vpack.c.bf16 %v675_v24, %v672_v23  ;;  %v679_v34 = vld [vmem:[#allocation8 + $0x98] sm:$0xff]  ;;  %v674_v36 = vld [vmem:[#allocation8 + $0x70] sm:$0xff]  ;;  %v681_v40 = vld [vmem:[#allocation8 + $0xa8] sm:$0xff] }
 0x18b   : > { %2666 = vmatprep.subr.bf16.mxu1 %v2665_v22  ;;  %v2641_v37 = vpack.c.bf16 %v682_v35, %v679_v34  ;;  %v678_v39 = vld [vmem:[#allocation8 + $0x90] sm:$0xff]  ;;  %v2669_v41 = vpack.c.bf16 %v677_v38, %v674_v36  ;;  %v685_v43 = vld [vmem:[#allocation8 + $0xc8] sm:$0xff]  ;;  %v688_v44 = vld [vmem:[#allocation8 + $0xe0] sm:$0xff]  ;;  %p3469_p10 = pnand %p3468_p2, %p4343_p8 }
 0x18c   : > { %2636 = vmatpush1.bf16.msra.mxu0 %v2635_v18  ;;  %v2643_v42 = vpack.c.bf16 %v681_v40, %v678_v39  ;;  %v680_v45 = vld [vmem:[#allocation8 + $0xa0] sm:$0xff]  ;;  %v2645_v46 = vpack.c.bf16 %v688_v44, %v685_v43  ;;  %v683_v47 = vld [vmem:[#allocation8 + $0xb8] sm:$0xff]  ;;  %v694_v53 = vld [vmem:[#allocation8 + $0x110] sm:$0xff]  ;;  %v710_v39 = vlaneseq }
 0x18d   : > { %2638 = vmatprep.subr.bf16.mxu0 %v2637_v21  ;;  %v684_v48 = vld [vmem:[#allocation8 + $0xc0] sm:$0xff]  ;;  %v687_v49 = vld [vmem:[#allocation8 + $0xd8] sm:$0xff]  ;;  %v2673_v50 = vpack.c.bf16 %v683_v47, %v680_v45  ;;  %v686_v54 = vld [vmem:[#allocation8 + $0xd0] sm:$0xff]  ;;  %s4228_s21 = scalar_lea.hbm %s4342_s1, %s2396_s13  ;;  %p3470_p11 = pneg %p3469_p10 }
 0x18e   : > { %2668 = vmatpush3.bf16.msra.mxu1 %v2665_v22  ;;  %v2647_v51 = vpack.c.bf16 %v687_v49, %v684_v48  ;;  %v691_v52 = vld [vmem:[#allocation8 + $0xf8] sm:$0xff]  ;;  %v689_v56 = vld [vmem:[#allocation8 + $0xe8] sm:$0xff]  ;;  %v690_v57 = vld [vmem:[#allocation8 + $0xf0] sm:$0xff]  ;;  %v4082_v40 = vshrl.u32 %v710_v39, 7 }
 0x18f   : > { %2670 = vmatprep.subr.bf16.mxu1 %v2669_v41  ;;  %v2649_v55 = vpack.c.bf16 %v694_v53, %v691_v52  ;;  %v693_v58 = vld [vmem:[#allocation8 + $0x108] sm:$0xff]  ;;  %v2677_v59 = vpack.c.bf16 %v689_v56, %v686_v54  ;;  %v700_v62 = vld [vmem:[#allocation8 + $0x140] sm:$0xff]  ;;  %v695_v3 = vld [vmem:[#allocation8 + $0x118] sm:$0xff] }
 0x190   : > { %2640 = vmatpush1.bf16.msra.mxu0 %v2639_v25  ;;  %v2651_v60 = vpack.c.bf16 %v693_v58, %v690_v57  ;;  %v697_v61 = vld [vmem:[#allocation8 + $0x128] sm:$0xff]  ;;  %v692_v63 = vld [vmem:[#allocation8 + $0x100] sm:$0xff]  ;;  %v699_v5 = vld [vmem:[#allocation8 + $0x138] sm:$0xff]  ;;  %v720_v43 = vsub.s32 2, %v4082_v40 }
 0x191   : > { %2642 = vmatprep.subr.bf16.mxu0 %v2641_v37  ;;  %v2653_v2 = vpack.c.bf16 %v700_v62, %v697_v61  ;;  %v696_v4 = vld [vmem:[#allocation8 + $0x120] sm:$0xff]  ;;  %v2681_v7 = vpack.c.bf16 %v695_v3, %v692_v63  ;;  %v703_v9 = vld [vmem:[#allocation8 + $0x158] sm:$0xff]  ;;  %v706_v10 = vld [vmem:[#allocation8 + $0x170] sm:$0xff] }
 0x192   : > { %2672 = vmatpush3.bf16.msra.mxu1 %v2669_v41  ;;  %v2655_v8 = vpack.c.bf16 %v699_v5, %v696_v4  ;;  %v698_v11 = vld [vmem:[#allocation8 + $0x130] sm:$0xff]  ;;  %v2657_v12 = vpack.c.bf16 %v706_v10, %v703_v9  ;;  %v701_v13 = vld [vmem:[#allocation8 + $0x148] sm:$0xff]  ;;  %v704_v18 = vld [vmem:[#allocation8 + $0x160] sm:$0xff]  ;;  %v712_v41 = vsub.s32 0, %v4082_v40 }
 0x193   : > { %2674 = vmatprep.subr.bf16.mxu1 %v2673_v50  ;;  %v702_v14 = vld [vmem:[#allocation8 + $0x150] sm:$0xff]  ;;  %v705_v15 = vld [vmem:[#allocation8 + $0x168] sm:$0xff]  ;;  %v2685_v16 = vpack.c.bf16 %v701_v13, %v698_v11  ;;  %v707_v19 = vld [vmem:[#allocation8 + $0x178] sm:$0xff] }
 0x194   : > { %2644 = vmatpush1.bf16.msra.mxu0 %v2643_v42  ;;  %v2659_v17 = vpack.c.bf16 %v705_v15, %v702_v14  ;;  %v2689_v20 = vpack.c.bf16 %v707_v19, %v704_v18  ;;  %vm4097_vm1 = vmpackc.low %vm877_vm0, %vm877_vm0 }
 0x195   : > { %2646 = vmatprep.subr.bf16.mxu0 %v2645_v46 }
 0x196   : > { %2676 = vmatpush3.bf16.msra.mxu1 %v2673_v50 }
 0x197   : > { %2678 = vmatprep.subr.bf16.mxu1 %v2677_v59 }
 0x198   : > { %2648 = vmatpush1.bf16.msra.mxu0 %v2647_v51 }
 0x199   : > { %2650 = vmatprep.subr.bf16.mxu0 %v2649_v55 }
 0x19a   : > { %2680 = vmatpush3.bf16.msra.mxu1 %v2677_v59 }
 0x19b   : > { %2682 = vmatprep.subr.bf16.mxu1 %v2681_v7 }
 0x19c   : > { %2652 = vmatpush1.bf16.msra.mxu0 %v2651_v60 }
 0x19d   : > { %2654 = vmatprep.subr.bf16.mxu0 %v2653_v2 }
 0x19e   : > { %2684 = vmatpush3.bf16.msra.mxu1 %v2681_v7 }
 0x19f   : > { %2686 = vmatprep.subr.bf16.mxu1 %v2685_v16 }
 0x1a0   : > { %2656 = vmatpush1.bf16.msra.mxu0 %v2655_v8 }
 0x1a1   : > { %2658 = vmatprep.subr.bf16.mxu0 %v2657_v12 }
 0x1a2   : > { %2688 = vmatpush3.bf16.msra.mxu1 %v2685_v16 }
 0x1a3   : > { %2690 = vmatprep.subr.bf16.mxu1 %v2689_v20 }
 0x1a4   : > { %2660 = vmatpush1.bf16.msra.mxu0 %v2659_v17 }
 0x1a6   : > { %2692 = vmatpush3.bf16.msra.mxu1 %v2689_v20 }
 0x211   : > { %v622_v26 = vpop.xlane.xlu0 %621 }
 0x212   : > { %v626_v27 = vmul.f32 0.0078125, %v622_v26 }
 0x214   : > { %v4069_v28 = vsub.f32 %v4062_v0, %v626_v27 }
 0x215   : > { %v624_v29 = vpop.xlane.xlu0 %623 }
 0x216   : > { %v627_v30 = vmul.f32 0.0078125, %v624_v29  ;;  %v630_v31 = vmul.f32 %v4069_v28, %v4069_v28  ;;  %v2360_v29 = vld [vmem:[#allocation5] ss:$0 sm:$0xff] }
 0x218   : > { %v4074_v32 = vsub.f32 %v4065_v1, %v627_v30  ;;  %632 = vadd.xlane.f32.xlu1 %v630_v31  ;;  %v2361_v31 = vld [vmem:[#allocation7] ss:$0 sm:$0xff] }
 0x21a   : > { %v631_v33 = vmul.f32 %v4074_v32, %v4074_v32 }
 0x21c   : > { %634 = vadd.xlane.f32.xlu1 %v631_v33 }
 0x2a5   : > { %v633_v21 = vpop.xlane.xlu1 %632 }
 0x2a6   : > { %v636_v22 = vmul.f32 0.0078125, %v633_v21 }
 0x2a8   : > { %v638_v23 = vadd.f32 1e-05, %v636_v22 }
 0x2a9   : > { %v635_v24 = vpop.xlane.xlu1 %634 }
 0x2aa   : > { %3053 = vrsqrt.f32 %v638_v23  ;;  %v637_v25 = vmul.f32 0.0078125, %v635_v24 }
 0x2ac   : > { %v639_v26 = vadd.f32 1e-05, %v637_v25 }
 0x2ae   : > { %3055 = vrsqrt.f32 %v639_v26 }
 0x2b4   : > { %v3054_v27 = vpop.eup %3053 }
 0x2b5   : > { %v642_v30 = vmul.f32 %v3054_v27, %v4069_v28  ;;  %v708_v28 = vld [vmem:[#allocation10] sm:$0x7] }
 0x2b6   : > { %v713_v42 = vrot.slane %v708_v28, %v712_v41  ;;  %v721_v47 = vrot.slane %v708_v28, %v720_v43 }
 0x2b7   : > { %v650_v33 = vmul.f32 %v2360_v29, %v642_v30 }
 0x2b8   : > { %v3056_v34 = vpop.eup %3055 }
 0x2b9   : > { %v658_v35 = vadd.f32 %v2361_v31, %v650_v33  ;;  %v643_v36 = vmul.f32 %v3056_v34, %v4074_v32  ;;  %v716_v32 = vsub.s32 1, %v4082_v40 }
 0x2bb   : > { %790 = vmatmul.mubr.f32.vlgmr.msra.gmra.mrb[0].mxu0 %v658_v35  ;;  %2535 = vmatprep.mubr.f32.mxu1 %v658_v35  ;;  %v651_v37 = vmul.f32 %v2360_v29, %v643_v36  ;;  %v717_v48 = vrot.slane %v708_v28, %v716_v32 }
 0x2bc   : > { %795 = vmatprep.mubr.f32.mxu0 %v3578_v6 }
 0x2bd   : > { %v659_v38 = vadd.f32 %v2361_v31, %v651_v37 }
 0x2bf   : > { %796 = vmatmul.mubr.f32.gmra.mrb[2].mxu0 %v659_v38  ;;  %2536 = vmatmul.mubr.f32.vlgmr.msra.gmra.mrb[0].mxu1 %v659_v38 }
 0x38e   : > { %v791_v44 = vpop.f32.mrb[0].mxu0 }
 0x38f   : > { %v4089_v45 = vadd.f32 %v791_v44, %v713_v42  ;;  %v793_v46 = vpop.f32.mrb[1].mxu0 }
 0x390   : > { %v794_v54 = vadd.f32 %v793_v46, %v717_v48 }
 0x391   : > { %2542 = vmatprep.mubr.msk.f32.mxu1 %vm877_vm0, %v4089_v45 }
 0x392   : > { %v797_v49 = vpop.f32.mrb[2].mxu0  ;;  %v2537_v50 = vpop.f32.mrb[0].mxu1 }
 0x393   : > { %v874_v51 = vadd.f32 %v2537_v50, %v721_v47  ;;  %v799_v52 = vpop.f32.mrb[3].mxu0  ;;  %v868_v53 = vpop.f32.mrb[1].mxu1  ;;  %v4109_v62 = vadd.f32 %v797_v49, %v713_v42 }
 0x394   : > { %v800_v55 = vadd.f32 %v799_v52, %v717_v48  ;;  %v869_v56 = vadd.f32 %v868_v53, %v721_v47 }
 0x396   : > { %v2693_v58 = vpack.c.bf16 %v800_v55, %v794_v54  ;;  %v2699_v59 = vpack.c.bf16 %v874_v51, %v869_v56  ;;  %v4101_v60 = vpack.i.bf16 %v800_v55, %v794_v54  ;;  %v4103_v61 = vpack.i.bf16 %v874_v51, %v869_v56 }
 0x398   : > { %2695 = vmatprep.subr.msk.bf16.mxu1 %vm4097_vm1, %v2693_v58 }
 0x399   : > { %2698 = vmatpush3.bf16.xpose.msk.msra.mxu1 %vm4097_vm1, %v2693_v58 }
 0x39a   : > { %2700 = vmatprep.subr.bf16.mxu1 %v2699_v59 }
 0x3a0   : > { %2543 = vmatmul.mubr.msk.f32.vlgmr.msra.gmra.mrb[2].mxu1 %vm877_vm0, %v4109_v62 }
 0x3a1   : > { %2702 = vmatpush3.bf16.msra.mxu1 %v2699_v59 }
 0x473   : > { %v2544_v63 = vpop.f32.mrb[2].mxu1 }
 0x474   : > { %v966_v2 = vmul.f32 0.17677669, %v2544_v63  ;;  %v956_v3 = vpop.f32.mrb[3].mxu1 }
 0x475   : > { %v965_v4 = vmul.f32 0.17677669, %v956_v3 }
 0x476   : > { %v971_v5 = vsel %vm967_vm2, %v966_v2, -inf }
 0x477   : > { %972 = vmax.xlane.f32.xlu1 %v971_v5  ;;  %v968_v7 = vsel %vm967_vm2, %v965_v4, -inf }
 0x478   : > { %969 = vmax.xlane.f32.xlu0 %v968_v7 }
 0x504   : > { %v973_v8 = vpop.xlane.xlu1 %972 }
 0x505   : > { %v975_v9 = vsub.f32 %v966_v2, %v973_v8  ;;  %v970_v10 = vpop.xlane.xlu0 %969 }
 0x506   : > { %v974_v11 = vsub.f32 %v965_v4, %v970_v10 }
 0x507   : > { %v978_v12 = vmul.f32 1.442695, %v975_v9 }
 0x508   : > { %v976_v13 = vmul.f32 1.442695, %v974_v11 }
 0x509   : > { %3057 = vpow2.f32 %v978_v12 }
 0x50a   : > { %3059 = vpow2.f32 %v976_v13 }
 0x513   : > { %v3058_v14 = vpop.eup %3057 }
 0x514   : > { %v3060_v15 = vpop.eup %3059  ;;  %v983_v16 = vsel %vm967_vm2, %v3058_v14, 0.0 }
 0x515   : > { %984 = vadd.xlane.f32.xlu1 %v983_v16  ;;  %v980_v17 = vsel %vm967_vm2, %v3060_v15, 0.0 }
 0x516   : > { %981 = vadd.xlane.f32.xlu0 %v980_v17 }
 0x526   : > { %3014 = vrot.lane.b32.xlu1 %v4101_v60, %s3579_s24 }
 0x52a   : > { %1071 = vrot.lane.b32.xlu1 %v4089_v45, %s3580_s20 }
 0x52c   : > { %3009 = vrot.lane.b32.xlu0 %v4101_v60, %s3580_s20 }
 0x52e   : > { %1073 = vrot.lane.b32.xlu1 %v4109_v62, %s3580_s20 }
 0x530   : > { %1275 = vrot.lane.b32.xlu0 %v4089_v45, %s3579_s24 }
 0x532   : > { %1277 = vrot.lane.b32.xlu1 %v4109_v62, %s3579_s24 }
 0x5a2   : > { %v985_v18 = vpop.xlane.xlu1 %984 }
 0x5a3   : > { %3061 = vrcp.f32 %v985_v18  ;;  %v982_v19 = vpop.xlane.xlu0 %981 }
 0x5a4   : > { %3063 = vrcp.f32 %v982_v19 }
 0x5a6   : > { %v3015_v24 = vpop.permute.xlu1 %3014 }
 0x5a7   : > { %v3010_v20 = vpop.permute.xlu0 %3009  ;;  %v3017_v27 = vunpack.i.h.bf16 %v3015_v24  ;;  %v3016_v29 = vunpack.i.l.bf16 %v3015_v24 }
 0x5a8   : > { %v3012_v21 = vunpack.i.h.bf16 %v3010_v20  ;;  %v3011_v22 = vunpack.i.l.bf16 %v3010_v20 }
 0x5a9   : > { %v2713_v33 = vpack.c.bf16 %v3017_v27, %v3016_v29 }
 0x5aa   : > { %v2703_v23 = vpack.c.bf16 %v3012_v21, %v3011_v22  ;;  %v1072_v34 = vpop.permute.xlu1 %1071 }
 0x5ab   : > { %v1276_v36 = vpop.permute.xlu0 %1275 }
 0x5ac   : > { %2705 = vmatprep.subr.msk.bf16.mxu1 %vm4097_vm1, %v2703_v23 }
 0x5ad   : > { %v3062_v25 = vpop.eup %3061 }
 0x5ae   : > { %v3064_v26 = vpop.eup %3063  ;;  %v989_v31 = vmul.f32 %v3062_v25, %v3058_v14  ;;  %v1074_v35 = vpop.permute.xlu1 %1073 }
 0x5af   : > { %v988_v30 = vmul.f32 %v3064_v26, %v3060_v15 }
 0x5b1   : > { %2549 = vmatprep.mubr.msk.f32.mxu1 %vm967_vm2, %v988_v30 }
 0x5b2   : > { %2550 = vmatmul.mubr.msk.f32.vlgmr.msra.gmra.mrb[4].mxu1 %vm967_vm2, %v989_v31  ;;  %v1278_v37 = vpop.permute.xlu1 %1277 }
 0x5b3   : > { %2708 = vmatpush3.bf16.xpose.msk.msra.mxu1 %vm4097_vm1, %v2703_v23  ;;  %2556 = vmatprep.mubr.msk.f32.mxu1 %vm877_vm0, %v1072_v34 }
 0x5b4   : > { %2715 = vmatprep.subr.msk.bf16.mxu1 %vm4097_vm1, %v2713_v33 }
 0x5ba   : > { %2557 = vmatmul.mubr.msk.f32.vlgmr.msra.gmra.mrb[6].mxu1 %vm877_vm0, %v1074_v35 }
 0x5bb   : > { %2718 = vmatpush3.bf16.xpose.msk.msra.mxu1 %vm4097_vm1, %v2713_v33  ;;  %2570 = vmatprep.mubr.msk.f32.mxu1 %vm877_vm0, %v1276_v36 }
 0x5c2   : > { %2571 = vmatmul.mubr.msk.f32.vlgmr.msra.gmra.mrb[8].mxu1 %vm877_vm0, %v1278_v37 }
 0x685   : > { %v4143_v38 = vpop.f32.mrb[4].mxu1 }
 0x686   : > { %v4145_v39 = vpop.f32.mrb[5].mxu1 }
 0x68d   : > { %v2558_v28 = vpop.f32.mrb[6].mxu1 }
 0x68e   : > { %v1153_v42 = vpop.f32.mrb[7].mxu1  ;;  %v1163_v50 = vmul.f32 0.17677669, %v2558_v28 }
 0x68f   : > { %v1162_v8 = vmul.f32 0.17677669, %v1153_v42 }
 0x690   : > { %v1167_v51 = vsel %vm967_vm2, %v1163_v50, -inf }
 0x691   : > { %v1164_v9 = vsel %vm967_vm2, %v1162_v8, -inf }
 0x695   : > { %v2572_v43 = vpop.f32.mrb[8].mxu1 }
 0x696   : > { %v1367_v44 = vmul.f32 0.17677669, %v2572_v43  ;;  %v1357_v46 = vpop.f32.mrb[9].mxu1 }
 0x697   : > { %v1366_v47 = vmul.f32 0.17677669, %v1357_v46 }
 0x698   : > { %v1371_v48 = vsel %vm967_vm2, %v1367_v44, -inf }
 0x699   : > { %1372 = vmax.xlane.f32.xlu1 %v1371_v48  ;;  %v1368_v49 = vsel %vm967_vm2, %v1366_v47, -inf }
 0x69a   : > { %1369 = vmax.xlane.f32.xlu0 %v1368_v49 }
 0x6aa   : > { %3024 = vrot.lane.b32.xlu1 %v4101_v60, %s3581_s17 }
 0x6ae   : > { %1477 = vrot.lane.b32.xlu1 %v4089_v45, %s3581_s17 }
 0x6b2   : > { %1479 = vrot.lane.b32.xlu1 %v4109_v62, %s3581_s17 }
 0x6d6   : > { %1168 = vmax.xlane.f32.xlu1 %v1167_v51 }
 0x726   : > { %v1373_v52 = vpop.xlane.xlu1 %1372 }
 0x727   : > { %v1375_v53 = vsub.f32 %v1367_v44, %v1373_v52  ;;  %v1370_v54 = vpop.xlane.xlu0 %1369 }
 0x728   : > { %v1374_v55 = vsub.f32 %v1366_v47, %v1370_v54 }
 0x729   : > { %v1378_v56 = vmul.f32 1.442695, %v1375_v53 }
 0x72a   : > { %v1376_v58 = vmul.f32 1.442695, %v1374_v55  ;;  %v3025_v62 = vpop.permute.xlu1 %3024 }
 0x72b   : > { %3065 = vpow2.f32 %v1378_v56  ;;  %v3027_v15 = vunpack.i.h.bf16 %v3025_v62  ;;  %v3026_v16 = vunpack.i.l.bf16 %v3025_v62 }
 0x72c   : > { %3067 = vpow2.f32 %v1376_v58 }
 0x72d   : > { %v2723_v20 = vpack.c.bf16 %v3027_v15, %v3026_v16  ;;  %v1712_v15 = vld [vmem:[#allocation11 + $0x8] sm:$0xff]  ;;  %v1713_v16 = vld [vmem:[#allocation11 + $0x10] sm:$0xff] }
 0x72e   : > { %v1478_v2 = vpop.permute.xlu1 %1477 }
 0x732   : > { %v1480_v3 = vpop.permute.xlu1 %1479 }
 0x735   : > { %v3066_v59 = vpop.eup %3065 }
 0x736   : > { %v1383_v60 = vsel %vm967_vm2, %v3066_v59, 0.0  ;;  %v3068_v63 = vpop.eup %3067 }
 0x737   : > { %1384 = vadd.xlane.f32.xlu0 %v1383_v60  ;;  %v1380_v45 = vsel %vm967_vm2, %v3068_v63, 0.0 }
 0x73b   : > { %1381 = vadd.xlane.f32.xlu0 %v1380_v45 }
 0x751   : > { %3019 = vrot.lane.b32.xlu0 %v4103_v61, %s3579_s24 }
 0x763   : > { %v1169_v4 = vpop.xlane.xlu1 %1168 }
 0x764   : > { %v1171_v5 = vsub.f32 %v1163_v50, %v1169_v4 }
 0x766   : > { %v1174_v7 = vmul.f32 1.442695, %v1171_v5 }
 0x768   : > { %3069 = vpow2.f32 %v1174_v7 }
 0x770   : > { %1165 = vmax.xlane.f32.xlu0 %v1164_v9 }
 0x772   : > { %v4161_v10 = vpop.eup %3069 }
 0x773   : > { %v1179_v11 = vsel %vm967_vm2, %v4161_v10, 0.0 }
 0x774   : > { %1180 = vadd.xlane.f32.xlu1 %v1179_v11 }
 0x7c4   : > { %v1385_v12 = vpop.xlane.xlu0 %1384 }
 0x7c5   : > { %3071 = vrcp.f32 %v1385_v12 }
 0x7c8   : > { %v1382_v13 = vpop.xlane.xlu0 %1381 }
 0x7c9   : > { %3073 = vrcp.f32 %v1382_v13 }
 0x7cc   : > { %v3020_v14 = vpop.permute.xlu0 %3019 }
 0x7cd   : > { %v3022_v17 = vunpack.i.h.bf16 %v3020_v14  ;;  %v3021_v18 = vunpack.i.l.bf16 %v3020_v14  ;;  %v1711_v14 = vld [vmem:[#allocation11] sm:$0xff] }
 0x7cf   : > { %v2719_v19 = vpack.c.bf16 %v3022_v17, %v3021_v18  ;;  %v3072_v21 = vpop.eup %3071  ;;  %v2733_v17 = vpack.c.bf16 %v1712_v15, %v1711_v14  ;;  %v1714_v18 = vld [vmem:[#allocation11 + $0x18] sm:$0xff] }
 0x7d0   : > { %v1389_v24 = vmul.f32 %v3072_v21, %v3066_v59  ;;  %v1858_v14 = vld [vmem:[#allocation17 + $0x38] sm:$0xff] }
 0x7d1   : > { %2720 = vmatprep.subr.bf16.mxu1 %v2719_v19 }
 0x7d2   : > { %2722 = vmatpush3.bf16.msra.mxu1 %v2719_v19  ;;  %v2737_v19 = vpack.c.bf16 %v1714_v18, %v1713_v16  ;;  %v1857_v18 = vld [vmem:[#allocation17 + $0x30] sm:$0xff] }
 0x7d3   : > { %v3074_v22 = vpop.eup %3073  ;;  %2725 = vmatprep.subr.msk.bf16.mxu1 %vm4097_vm1, %v2723_v20 }
 0x7d4   : > { %v1388_v23 = vmul.f32 %v3074_v22, %v3068_v63  ;;  %v1717_v22 = vld [vmem:[#allocation11 + $0x30] sm:$0xff] }
 0x7d6   : > { %2577 = vmatprep.mubr.msk.f32.mxu1 %vm967_vm2, %v1388_v23  ;;  %v1718_v23 = vld [vmem:[#allocation11 + $0x38] sm:$0xff] }
 0x7d7   : > { %2578 = vmatmul.mubr.msk.f32.vlgmr.msra.gmra.mrb[10].mxu1 %vm967_vm2, %v1389_v24  ;;  %v2745_v24 = vpack.c.bf16 %v1718_v23, %v1717_v22 }
 0x7d8   : > { %2584 = vmatprep.mubr.msk.f32.mxu1 %vm877_vm0, %v1478_v2 }
 0x7db   : > { %2728 = vmatpush3.bf16.xpose.msk.msra.mxu1 %vm4097_vm1, %v2723_v20  ;;  %v1715_v20 = vld [vmem:[#allocation11 + $0x20] sm:$0xff] }
 0x7e2   : > { %2585 = vmatmul.mubr.msk.f32.vlgmr.msra.gmra.mrb[12].mxu1 %vm877_vm0, %v1480_v3 }
 0x7e3   : > { %1959 = vmatprep.mubr.f32.mxu1 %v3578_v6 }
 0x7fd   : > { %v1166_v25 = vpop.xlane.xlu0 %1165 }
 0x7fe   : > { %v1170_v29 = vsub.f32 %v1162_v8, %v1166_v25  ;;  %v1719_v25 = vld [vmem:[#allocation11 + $0x40] sm:$0xff] }
 0x800   : > { %v1172_v31 = vmul.f32 1.442695, %v1170_v29  ;;  %v1720_v29 = vld [vmem:[#allocation11 + $0x48] sm:$0xff] }
 0x801   : > { %v1181_v58 = vpop.xlane.xlu1 %1180 }
 0x802   : > { %3075 = vpow2.f32 %v1172_v31  ;;  %v2749_v31 = vpack.c.bf16 %v1720_v29, %v1719_v25 }
 0x80c   : > { %v3076_v28 = vpop.eup %3075 }
 0x80d   : > { %v1176_v42 = vsel %vm967_vm2, %v3076_v28, 0.0 }
 0x8aa   : > { %v4174_v26 = vpop.f32.mrb[10].mxu1 }
 0x8ab   : > { %v4176_v27 = vpop.f32.mrb[11].mxu1 }
 0x8ac   : > { %v3043_v30 = vpack.i.bf16 %v4174_v26, %v4176_v27 }
 0x8b5   : > { %v2586_v33 = vpop.f32.mrb[12].mxu1 }
 0x8b6   : > { %v1559_v34 = vpop.f32.mrb[13].mxu1  ;;  %v1569_v57 = vmul.f32 0.17677669, %v2586_v33  ;;  %v1721_v33 = vld [vmem:[#allocation11 + $0x50] sm:$0xff] }
 0x8b7   : > { %v1568_v35 = vmul.f32 0.17677669, %v1559_v34  ;;  %v1722_v34 = vld [vmem:[#allocation11 + $0x58] sm:$0xff] }
 0x8b8   : > { %v1573_v37 = vsel %vm967_vm2, %v1569_v57, -inf }
 0x8b9   : > { %v1570_v36 = vsel %vm967_vm2, %v1568_v35, -inf }
 0x8ba   : > { %1571 = vmax.xlane.f32.xlu0 %v1570_v36  ;;  %v1724_v36 = vld [vmem:[#allocation11 + $0x68] sm:$0xff] }
 0x8be   : > { %1574 = vmax.xlane.f32.xlu0 %v1573_v37 }
 0x8c2   : > { %1177 = vadd.xlane.f32.xlu0 %v1176_v42  ;;  %v1726_v42 = vld [vmem:[#allocation11 + $0x78] sm:$0xff] }
 0x947   : > { %v1572_v43 = vpop.xlane.xlu0 %1571 }
 0x948   : > { %v1576_v44 = vsub.f32 %v1568_v35, %v1572_v43  ;;  %v2753_v35 = vpack.c.bf16 %v1722_v34, %v1721_v33 }
 0x94a   : > { %v1578_v46 = vmul.f32 1.442695, %v1576_v44 }
 0x94b   : > { %v1575_v47 = vpop.xlane.xlu0 %1574 }
 0x94c   : > { %3077 = vpow2.f32 %v1578_v46  ;;  %v1577_v48 = vsub.f32 %v1569_v57, %v1575_v47  ;;  %v1723_v57 = vld [vmem:[#allocation11 + $0x60] sm:$0xff] }
 0x94d   : > { %v2757_v37 = vpack.c.bf16 %v1724_v36, %v1723_v57  ;;  %v1864_v57 = vld [vmem:[#allocation17 + $0x68] sm:$0xff]  ;;  %v1866_v36 = vld [vmem:[#allocation17 + $0x78] sm:$0xff] }
 0x94e   : > { %v1580_v49 = vmul.f32 1.442695, %v1577_v48 }
 0x94f   : > { %v1178_v50 = vpop.xlane.xlu0 %1177 }
 0x950   : > { %3079 = vpow2.f32 %v1580_v49 }
 0x951   : > { %3081 = vrcp.f32 %v1178_v50 }
 0x952   : > { %3083 = vrcp.f32 %v1181_v58 }
 0x956   : > { %v3078_v51 = vpop.eup %3077 }
 0x957   : > { %v1582_v52 = vsel %vm967_vm2, %v3078_v51, 0.0 }
 0x958   : > { %1583 = vadd.xlane.f32.xlu0 %v1582_v52 }
 0x95a   : > { %v3080_v53 = vpop.eup %3079 }
 0x95b   : > { %v3082_v54 = vpop.eup %3081  ;;  %v1585_v55 = vsel %vm967_vm2, %v3080_v53, 0.0 }
 0x95c   : > { %1586 = vadd.xlane.f32.xlu1 %v1585_v55  ;;  %v1184_v56 = vmul.f32 %v3082_v54, %v3076_v28  ;;  %v3084_v3 = vpop.eup %3083  ;;  %v1725_v28 = vld [vmem:[#allocation11 + $0x70] sm:$0xff] }
 0x95d   : > { %v1185_v9 = vmul.f32 %v3084_v3, %v4161_v10  ;;  %v1716_v10 = vld [vmem:[#allocation11 + $0x28] sm:$0xff]  ;;  %v2761_v43 = vpack.c.bf16 %v1726_v42, %v1725_v28  ;;  %v1865_v42 = vld [vmem:[#allocation17 + $0x70] sm:$0xff] }
 0x95e   : > { %2563 = vmatprep.mubr.msk.f32.mxu0 %vm967_vm2, %v1184_v56  ;;  %v2741_v21 = vpack.c.bf16 %v1716_v10, %v1715_v20  ;;  %v1859_v10 = vld [vmem:[#allocation17 + $0x40] sm:$0xff] }
 0x95f   : > { %v1863_v28 = vld [vmem:[#allocation17 + $0x60] sm:$0xff] }
 0x96d   : > { %3034 = vrot.lane.b32.xlu1 %v4103_v61, %s3581_s17 }
 0x96e   : > { %3029 = vrot.lane.b32.xlu0 %v4103_v61, %s3580_s20 }
 0x9e5   : > { %v1584_v59 = vpop.xlane.xlu0 %1583 }
 0x9e6   : > { %3085 = vrcp.f32 %v1584_v59 }
 0x9e9   : > { %v1587_v60 = vpop.xlane.xlu1 %1586  ;;  %v3030_v63 = vpop.permute.xlu0 %3029 }
 0x9ea   : > { %3087 = vrcp.f32 %v1587_v60  ;;  %v3032_v45 = vunpack.i.h.bf16 %v3030_v63  ;;  %v3031_v62 = vunpack.i.l.bf16 %v3030_v63 }
 0x9ec   : > { %v2709_v2 = vpack.c.bf16 %v3032_v45, %v3031_v62 }
 0x9ed   : > { %v3035_v4 = vpop.permute.xlu1 %3034 }
 0x9ee   : > { %v3037_v5 = vunpack.i.h.bf16 %v3035_v4  ;;  %v3036_v7 = vunpack.i.l.bf16 %v3035_v4  ;;  %2710 = vmatprep.subr.bf16.mxu0 %v2709_v2 }
 0x9ef   : > { %2712 = vmatpush3.bf16.msra.mxu0 %v2709_v2  ;;  %v2386_v2 = vld [vmem:[#allocation13] ss:$0 sm:$0xff] }
 0x9f0   : > { %v3086_v8 = vpop.eup %3085  ;;  %v2729_v61 = vpack.c.bf16 %v3037_v5, %v3036_v7 }
 0x9f1   : > { %v1590_v11 = vmul.f32 %v3086_v8, %v3078_v51 }
 0x9f2   : > { %2564 = vmatmul.mubr.msk.f32.vlgmr.msra.gmra.mrb[4].mxu0 %vm967_vm2, %v1185_v9  ;;  %2730 = vmatprep.subr.bf16.mxu0 %v2729_v61  ;;  %v1854_v9 = vld [vmem:[#allocation17 + $0x18] sm:$0xff] }
 0x9f3   : > { %2732 = vmatpush3.bf16.msra.mxu0 %v2729_v61  ;;  %2591 = vmatprep.mubr.msk.f32.mxu0 %vm967_vm2, %v1590_v11  ;;  %v1851_v61 = vld [vmem:[#allocation17] sm:$0xff] }
 0x9f4   : > { %v3088_v12 = vpop.eup %3087  ;;  %2734 = vmatprep.subr.bf16.mxu0 %v2733_v17 }
 0x9f5   : > { %v1591_v13 = vmul.f32 %v3088_v12, %v3080_v53  ;;  %v1853_v12 = vld [vmem:[#allocation17 + $0x10] sm:$0xff] }
 0x9f6   : > { %v2767_v15 = vpack.c.bf16 %v1853_v12, %v1851_v61 }
 0x9f7   : > { %2592 = vmatmul.mubr.msk.f32.vlgmr.msra.gmra.mrb[6].mxu0 %vm967_vm2, %v1591_v13  ;;  %v1856_v13 = vld [vmem:[#allocation17 + $0x28] sm:$0xff] }
 0x9f8   : > { %2736 = vmatpush3.bf16.msra.mxu0 %v2733_v17  ;;  %v2769_v16 = vpack.c.bf16 %v1858_v14, %v1856_v13  ;;  %v1855_v17 = vld [vmem:[#allocation17 + $0x20] sm:$0xff]  ;;  %v2387_v13 = vld [vmem:[#allocation14] ss:$0 sm:$0xff] }
 0x9f9   : > { %2738 = vmatprep.subr.bf16.mxu0 %v2737_v19 }
 0x9fc   : > { %2740 = vmatpush3.bf16.msra.mxu0 %v2737_v19  ;;  %v1862_v19 = vld [vmem:[#allocation17 + $0x58] sm:$0xff] }
 0x9fd   : > { %2742 = vmatprep.subr.bf16.mxu0 %v2741_v21 }
 0xa00   : > { %2744 = vmatpush3.bf16.msra.mxu0 %v2741_v21  ;;  %v1861_v21 = vld [vmem:[#allocation17 + $0x50] sm:$0xff] }
 0xa01   : > { %2746 = vmatprep.subr.bf16.mxu0 %v2745_v24  ;;  %v2775_v22 = vpack.c.bf16 %v1861_v21, %v1859_v10  ;;  %v2025_v10 = vld [vmem:[#allocation20 + $0x88] sm:$0xff] }
 0xa04   : > { %2748 = vmatpush3.bf16.msra.mxu0 %v2745_v24 }
 0xa05   : > { %2750 = vmatprep.subr.bf16.mxu0 %v2749_v31 }
 0xa08   : > { %2752 = vmatpush3.bf16.msra.mxu0 %v2749_v31 }
 0xa09   : > { %2754 = vmatprep.subr.bf16.mxu0 %v2753_v35 }
 0xa0c   : > { %2756 = vmatpush3.bf16.msra.mxu0 %v2753_v35 }
 0xa0d   : > { %2758 = vmatprep.subr.bf16.mxu0 %v2757_v37 }
 0xa10   : > { %2760 = vmatpush3.bf16.msra.mxu0 %v2757_v37  ;;  %v2777_v37 = vpack.c.bf16 %v1866_v36, %v1864_v57  ;;  %v2028_v57 = vld [vmem:[#allocation20 + $0xa0] sm:$0xff] }
 0xa11   : > { %2762 = vmatprep.subr.bf16.mxu0 %v2761_v43 }
 0xa14   : > { %2764 = vmatpush3.bf16.msra.mxu0 %v2761_v43  ;;  %v2779_v43 = vpack.c.bf16 %v1865_v42, %v1863_v28  ;;  %v2013_v28 = vld [vmem:[#allocation20 + $0x28] sm:$0xff] }
 0xac5   : > { %v2565_v44 = vpop.f32.mrb[4].mxu0 }
 0xac6   : > { %v1266_v46 = vpop.f32.mrb[5].mxu0 }
 0xac7   : > { %v3038_v47 = vpack.i.bf16 %v2565_v44, %v1266_v46  ;;  %v1868_v44 = vld [vmem:[#allocation17 + $0x88] sm:$0xff]  ;;  %v1870_v46 = vld [vmem:[#allocation17 + $0x98] sm:$0xff] }
 0xac9   : > { %3039 = vrot.lane.b32.xlu1 %v3038_v47, %s3581_s17  ;;  %v2781_v47 = vpack.c.bf16 %v1870_v46, %v1868_v44  ;;  %v2031_v44 = vld [vmem:[#allocation20 + $0xb8] sm:$0xff] }
 0xaca   : > { %v2593_v48 = vpop.f32.mrb[6].mxu0 }
 0xacb   : > { %v1670_v49 = vpop.f32.mrb[7].mxu0 }
 0xacc   : > { %v3048_v50 = vpack.i.bf16 %v2593_v48, %v1670_v49  ;;  %v1867_v48 = vld [vmem:[#allocation17 + $0x80] sm:$0xff]  ;;  %v1869_v49 = vld [vmem:[#allocation17 + $0x90] sm:$0xff] }
 0xacd   : > { %3044 = vrot.lane.b32.xlu1 %v3043_v30, %s3579_s24  ;;  %s3471_s24 = sshll.u32 %s3582_s2, 4  ;;  %s3472_s24 = int_to_ptr.vmem [resolvable:$false] %s3471_s24 }
 0xace   : > { %3049 = vrot.lane.b32.xlu0 %v3048_v50, %s3580_s20  ;;  %v2783_v50 = vpack.c.bf16 %v1869_v49, %v1867_v48  ;;  %v2015_v48 = vld [vmem:[#allocation20 + $0x38] sm:$0xff]  ;;  %s3473_s20 = scalar_lea.vmem %s3472_s24, 512  ;;  %p3474_p12 = scmp.lt.s32.totalorder %s4223_s23, %s3472_s24 }
 0xacf   : > { %p3475_p0 = scmp.lt.s32.totalorder %s3473_s20, %s3467_s15 }
 0xad1   : > { %p3476_p5 = por %p3475_p0, %p3474_p12 }
 0xad3   : > { %p3477_p7 = pnand %p3476_p5, %p3470_p11 }
 0xb3b   : > { %v3040_v51 = vpop.permute.xlu1 %3039 }
 0xb3c   : > { %v3042_v52 = vunpack.i.h.bf16 %v3040_v51  ;;  %v3041_v53 = vunpack.i.l.bf16 %v3040_v51  ;;  %v1872_v51 = vld [vmem:[#allocation17 + $0xa8] sm:$0xff] }
 0xb3e   : > { %v1704_v59 = vsel %vm877_vm0, %v4143_v38, %v3042_v52  ;;  %v1703_v26 = vsel %vm877_vm0, %v4145_v39, %v3041_v53  ;;  %v1852_v39 = vld [vmem:[#allocation17 + $0x8] sm:$0xff]  ;;  %v1874_v52 = vld [vmem:[#allocation17 + $0xb8] sm:$0xff] }
 0xb3f   : > { %v3045_v54 = vpop.permute.xlu1 %3044  ;;  %v2765_v11 = vpack.c.bf16 %v1854_v9, %v1852_v39  ;;  %v2785_v53 = vpack.c.bf16 %v1874_v52, %v1872_v51  ;;  %v2033_v51 = vld [vmem:[#allocation20 + $0xc8] sm:$0xff] }
 0xb40   : > { %v3047_v55 = vunpack.i.h.bf16 %v3045_v54  ;;  %v3046_v56 = vunpack.i.l.bf16 %v3045_v54  ;;  %v3050_v58 = vpop.permute.xlu0 %3049  ;;  %v1871_v54 = vld [vmem:[#allocation17 + $0xa0] sm:$0xff] }
 0xb41   : > { %v3052_v60 = vunpack.i.h.bf16 %v3050_v58  ;;  %v3051_v63 = vunpack.i.l.bf16 %v3050_v58  ;;  %2766 = vmatprep.subr.bf16.mxu1 %v2765_v11 }
 0xb42   : > { %v1706_v27 = vsel %vm1705_vm3, %v1703_v26, %v3046_v56  ;;  %v1707_v30 = vsel %vm1705_vm3, %v1704_v59, %v3047_v55  ;;  %2768 = vmatpush1.bf16.msra.mxu1 %v2767_v15  ;;  %v1873_v55 = vld [vmem:[#allocation17 + $0xb0] sm:$0xff]  ;;  %v1876_v56 = vld [vmem:[#allocation17 + $0xc8] sm:$0xff]  ;;  %v1878_v59 = vld [vmem:[#allocation17 + $0xd8] sm:$0xff] }
 0xb43   : > { %v1709_v45 = vsel %vm1708_vm4, %v1706_v27, %v3051_v63  ;;  %v1710_v62 = vsel %vm1708_vm4, %v1707_v30, %v3052_v60  ;;  %2770 = vmatprep.subr.bf16.mxu1 %v2769_v16  ;;  %v2787_v58 = vpack.c.bf16 %v1873_v55, %v1871_v54  ;;  %v1875_v60 = vld [vmem:[#allocation17 + $0xc0] sm:$0xff]  ;;  %v1877_v63 = vld [vmem:[#allocation17 + $0xd0] sm:$0xff]  ;;  %v2789_v26 = vpack.c.bf16 %v1878_v59, %v1876_v56  ;;  %v1880_v27 = vld [vmem:[#allocation17 + $0xe8] sm:$0xff] }
 0xb44   : > { %2626 = vmatprep.mubr.f32.mxu0 %v1709_v45  ;;  %v1882_v30 = vld [vmem:[#allocation17 + $0xf8] sm:$0xff]  ;;  %v2791_v45 = vpack.c.bf16 %v1877_v63, %v1875_v60  ;;  %v2017_v54 = vld [vmem:[#allocation20 + $0x48] sm:$0xff] }
 0xb45   : > { %2627 = vmatmul.mubr.f32.vlgmr.msra.gmra.mrb[8].mxu0 %v1710_v62  ;;  %v2793_v62 = vpack.c.bf16 %v1882_v30, %v1880_v27  ;;  %v2388_v15 = vld [vmem:[#allocation16] ss:$0 sm:$0xff]  ;;  %v2034_v56 = vld [vmem:[#allocation20 + $0xd0] sm:$0xff]  ;;  %v2037_v27 = vld [vmem:[#allocation20 + $0xe8] sm:$0xff] }
 0xb46   : > { %v2018_v59 = vld [vmem:[#allocation20 + $0x50] sm:$0xff]  ;;  %v2019_v63 = vld [vmem:[#allocation20 + $0x58] sm:$0xff] }
 0xb47   : > { %v2819_v30 = vpack.c.bf16 %v2019_v63, %v2018_v59  ;;  %v2389_v63 = vld [vmem:[#allocation22] ss:$0 sm:$0xff] }
 0xc18   : > { %v2628_v3 = vpop.f32.mrb[8].mxu0 }
 0xc19   : > { %v1806_v4 = vadd.f32 %v2628_v3, %v2386_v2  ;;  %v1800_v5 = vpop.f32.mrb[9].mxu0  ;;  %v1881_v3 = vld [vmem:[#allocation17 + $0xf0] sm:$0xff] }
 0xc1a   : > { %v1801_v7 = vadd.f32 %v2386_v2, %v1800_v5  ;;  %v1879_v2 = vld [vmem:[#allocation17 + $0xe0] sm:$0xff] }
 0xc1b   : > { %v4205_v8 = vadd.f32 %v1806_v4, %v4065_v1  ;;  %v1860_v1 = vld [vmem:[#allocation17 + $0x48] sm:$0xff]  ;;  %v2795_v4 = vpack.c.bf16 %v1881_v3, %v1879_v2  ;;  %v2038_v3 = vld [vmem:[#allocation20 + $0xf0] sm:$0xff] }
 0xc1c   : > { %v4208_v38 = vadd.f32 %v1801_v7, %v4062_v0  ;;  %v2771_v0 = vpack.c.bf16 %v1857_v18, %v1855_v17  ;;  %v2773_v20 = vpack.c.bf16 %v1862_v19, %v1860_v1  ;;  %v2021_v2 = vld [vmem:[#allocation20 + $0x68] sm:$0xff] }
 0xc1d   : > { %1815 = vadd.xlane.f32.xlu0 %v4205_v8 }
 0xc1e   : > { %1813 = vadd.xlane.f32.xlu1 %v4208_v38  ;;  %2772 = vmatpush1.bf16.msra.mxu1 %v2771_v0 }
 0xc1f   : > { %2774 = vmatprep.subr.bf16.mxu1 %v2773_v20  ;;  %v2024_v20 = vld [vmem:[#allocation20 + $0x80] sm:$0xff] }
 0xc20   : > { %v2797_v21 = vpack.c.bf16 %v2025_v10, %v2024_v20 }
 0xc22   : > { %2776 = vmatpush1.bf16.msra.mxu1 %v2775_v22  ;;  %v2008_v22 = vld [vmem:[#allocation20] sm:$0xff]  ;;  %2798 = vmatprep.subr.bf16.mxu0 %v2797_v21 }
 0xc23   : > { %2778 = vmatprep.subr.bf16.mxu1 %v2777_v37  ;;  %v2012_v37 = vld [vmem:[#allocation20 + $0x20] sm:$0xff] }
 0xc24   : > { %v2807_v42 = vpack.c.bf16 %v2013_v28, %v2012_v37 }
 0xc26   : > { %2780 = vmatpush1.bf16.msra.mxu1 %v2779_v43  ;;  %v2030_v43 = vld [vmem:[#allocation20 + $0xb0] sm:$0xff] }
 0xc27   : > { %2782 = vmatprep.subr.bf16.mxu1 %v2781_v47  ;;  %v2809_v46 = vpack.c.bf16 %v2031_v44, %v2030_v43  ;;  %v2014_v47 = vld [vmem:[#allocation20 + $0x30] sm:$0xff] }
 0xc28   : > { %v2811_v49 = vpack.c.bf16 %v2015_v48, %v2014_v47 }
 0xc2a   : > { %2784 = vmatpush1.bf16.msra.mxu1 %v2783_v50  ;;  %v2032_v50 = vld [vmem:[#allocation20 + $0xc0] sm:$0xff] }
 0xc2b   : > { %2786 = vmatprep.subr.bf16.mxu1 %v2785_v53  ;;  %v2813_v52 = vpack.c.bf16 %v2033_v51, %v2032_v50  ;;  %v2016_v53 = vld [vmem:[#allocation20 + $0x40] sm:$0xff] }
 0xc2c   : > { %v2815_v55 = vpack.c.bf16 %v2017_v54, %v2016_v53 }
 0xc2e   : > { %2788 = vmatpush1.bf16.msra.mxu1 %v2787_v58  ;;  %v2035_v58 = vld [vmem:[#allocation20 + $0xd8] sm:$0xff] }
 0xc2f   : > { %2790 = vmatprep.subr.bf16.mxu1 %v2789_v26  ;;  %v2817_v60 = vpack.c.bf16 %v2035_v58, %v2034_v56  ;;  %v2036_v26 = vld [vmem:[#allocation20 + $0xe0] sm:$0xff] }
 0xc32   : > { %2792 = vmatpush1.bf16.msra.mxu1 %v2791_v45  ;;  %v2821_v45 = vpack.c.bf16 %v2037_v27, %v2036_v26 }
 0xc33   : > { %2794 = vmatprep.subr.bf16.mxu1 %v2793_v62  ;;  %v2020_v62 = vld [vmem:[#allocation20 + $0x60] sm:$0xff] }
 0xc36   : > { %2796 = vmatpush1.bf16.msra.mxu1 %v2795_v4  ;;  %v2039_v4 = vld [vmem:[#allocation20 + $0xf8] sm:$0xff] }
 0xcaa   : > { %v1816_v23 = vpop.xlane.xlu0 %1815 }
 0xcab   : > { %v1814_v24 = vpop.xlane.xlu1 %1813  ;;  %v1818_v25 = vmul.f32 0.0078125, %v1816_v23  ;;  %v2009_v23 = vld [vmem:[#allocation20 + $0x8] sm:$0xff] }
 0xcac   : > { %v1817_v29 = vmul.f32 0.0078125, %v1814_v24  ;;  %v2799_v24 = vpack.c.bf16 %v2009_v23, %v2008_v22 }
 0xcad   : > { %v1820_v33 = vsub.f32 %v4205_v8, %v1818_v25  ;;  %v2026_v25 = vld [vmem:[#allocation20 + $0x90] sm:$0xff] }
 0xcae   : > { %v1819_v31 = vsub.f32 %v4208_v38, %v1817_v29  ;;  %2800 = vmatpush3.bf16.msra.mxu0 %v2799_v24  ;;  %v2027_v29 = vld [vmem:[#allocation20 + $0x98] sm:$0xff] }
 0xcaf   : > { %v1822_v35 = vmul.f32 %v1820_v33, %v1820_v33 }
 0xcb0   : > { %v1821_v34 = vmul.f32 %v1819_v31, %v1819_v31 }
 0xcb2   : > { %1823 = vadd.xlane.f32.xlu0 %v1821_v34  ;;  %v2010_v34 = vld [vmem:[#allocation20 + $0x10] sm:$0xff] }
 0xcb6   : > { %1825 = vadd.xlane.f32.xlu0 %v1822_v35  ;;  %v2011_v35 = vld [vmem:[#allocation20 + $0x18] sm:$0xff] }
 0xd3f   : > { %v1824_v5 = vpop.xlane.xlu0 %1823 }
 0xd40   : > { %v1827_v7 = vmul.f32 0.0078125, %v1824_v5  ;;  %v2823_v5 = vpack.c.bf16 %v2021_v2, %v2020_v62 }
 0xd42   : > { %v1829_v39 = vadd.f32 1e-05, %v1827_v7  ;;  %v2825_v7 = vpack.c.bf16 %v2039_v4, %v2038_v3 }
 0xd43   : > { %v1826_v9 = vpop.xlane.xlu0 %1825 }
 0xd44   : > { %3089 = vrsqrt.f32 %v1829_v39  ;;  %v1828_v61 = vmul.f32 0.0078125, %v1826_v9  ;;  %v2022_v39 = vld [vmem:[#allocation20 + $0x70] sm:$0xff]  ;;  %v2023_v9 = vld [vmem:[#allocation20 + $0x78] sm:$0xff] }
 0xd46   : > { %v1830_v11 = vadd.f32 1e-05, %v1828_v61  ;;  %v2827_v61 = vpack.c.bf16 %v2023_v9, %v2022_v39 }
 0xd48   : > { %3091 = vrsqrt.f32 %v1830_v11  ;;  %v1883_v11 = vld [vmem:[#allocation19] sm:$0x3] }
 0xd4e   : > { %v3090_v12 = vpop.eup %3089 }
 0xd4f   : > { %v1833_v14 = vmul.f32 %v3090_v12, %v1819_v31  ;;  %v2801_v31 = vpack.c.bf16 %v2027_v29, %v2026_v25  ;;  %v1888_v12 = vrot.slane %v1883_v11, %v712_v41 }
 0xd51   : > { %v1841_v16 = vmul.f32 %v2387_v13, %v1833_v14  ;;  %2802 = vmatprep.subr.bf16.mxu0 %v2801_v31 }
 0xd52   : > { %v3092_v17 = vpop.eup %3091 }
 0xd53   : > { %v1849_v18 = vadd.f32 %v2388_v15, %v1841_v16  ;;  %v1834_v1 = vmul.f32 %v3092_v17, %v1820_v33  ;;  %v2803_v33 = vpack.c.bf16 %v2011_v35, %v2010_v34 }
 0xd55   : > { %1960 = vmatmul.mubr.f32.vlgmr.msra.gmra.mrb[14].mxu1 %v1849_v18  ;;  %v1842_v19 = vmul.f32 %v2387_v13, %v1834_v1  ;;  %2804 = vmatpush3.bf16.msra.mxu0 %v2803_v33  ;;  %v1892_v13 = vrot.slane %v1883_v11, %v716_v32 }
 0xd56   : > { %1965 = vmatprep.mubr.f32.mxu1 %v3578_v6  ;;  %v2029_v6 = vld [vmem:[#allocation20 + $0xa8] sm:$0xff] }
 0xd57   : > { %v1850_v0 = vadd.f32 %v2388_v15, %v1842_v19  ;;  %v2805_v36 = vpack.c.bf16 %v2029_v6, %v2028_v57 }
 0xd59   : > { %1966 = vmatmul.mubr.f32.gmra.mrb[16].mxu1 %v1850_v0  ;;  %2806 = vmatprep.subr.bf16.mxu0 %v2805_v36 }
 0xd5a   : > { %2808 = vmatpush3.bf16.msra.mxu0 %v2807_v42 }
 0xd5b   : > { %2810 = vmatprep.subr.bf16.mxu0 %v2809_v46 }
 0xd5e   : > { %2812 = vmatpush3.bf16.msra.mxu0 %v2811_v49 }
 0xd5f   : > { %2814 = vmatprep.subr.bf16.mxu0 %v2813_v52 }
 0xd62   : > { %2816 = vmatpush3.bf16.msra.mxu0 %v2815_v55 }
 0xd63   : > { %2818 = vmatprep.subr.bf16.mxu0 %v2817_v60 }
 0xd66   : > { %2820 = vmatpush3.bf16.msra.mxu0 %v2819_v30 }
 0xd67   : > { %2822 = vmatprep.subr.bf16.mxu0 %v2821_v45 }
 0xd6a   : > { %2824 = vmatpush3.bf16.msra.mxu0 %v2823_v5 }
 0xd6b   : > { %2826 = vmatprep.subr.bf16.mxu0 %v2825_v7 }
 0xd6e   : > { %2828 = vmatpush3.bf16.msra.mxu0 %v2827_v61 }
 0xe28   : > { %v1961_v14 = vpop.f32.mrb[14].mxu1 }
 0xe29   : > { %v1962_v15 = vadd.f32 %v1961_v14, %v1888_v12  ;;  %v1963_v16 = vpop.f32.mrb[15].mxu1 }
 0xe2a   : > { %v1964_v17 = vadd.f32 %v1963_v16, %v1892_v13 }
 0xe2b   : > { %v1972_v18 = vmul.f32 %v1962_v15, %v1962_v15 }
 0xe2c   : > { %v1973_v1 = vmul.f32 %v1964_v17, %v1964_v17  ;;  %v1967_v19 = vpop.f32.mrb[16].mxu1 }
 0xe2d   : > { %v1976_v0 = vmul.f32 %v1972_v18, %v1962_v15  ;;  %v1968_v20 = vadd.f32 %v1967_v19, %v1888_v12  ;;  %v1969_v10 = vpop.f32.mrb[17].mxu1 }
 0xe2e   : > { %v1977_v21 = vmul.f32 %v1973_v1, %v1964_v17  ;;  %v1970_v22 = vadd.f32 %v1969_v10, %v1892_v13 }
 0xe2f   : > { %v1980_v23 = vmul.f32 0.044715, %v1976_v0  ;;  %v1974_v24 = vmul.f32 %v1968_v20, %v1968_v20 }
 0xe30   : > { %v1981_v25 = vmul.f32 0.044715, %v1977_v21  ;;  %v1975_v29 = vmul.f32 %v1970_v22, %v1970_v22 }
 0xe31   : > { %v1984_v41 = vadd.f32 %v1980_v23, %v1962_v15  ;;  %v1978_v31 = vmul.f32 %v1974_v24, %v1968_v20 }
 0xe32   : > { %v1985_v40 = vadd.f32 %v1981_v25, %v1964_v17  ;;  %v1979_v32 = vmul.f32 %v1975_v29, %v1970_v22 }
 0xe33   : > { %v1988_v34 = vmul.f32 0.7978846, %v1984_v41  ;;  %v1982_v35 = vmul.f32 0.044715, %v1978_v31 }
 0xe34   : > { %v1989_v33 = vmul.f32 0.7978846, %v1985_v40  ;;  %v1983_v57 = vmul.f32 0.044715, %v1979_v32 }
 0xe35   : > { %3093 = vtanh.f32 %v1988_v34  ;;  %v1986_v6 = vadd.f32 %v1982_v35, %v1968_v20 }
 0xe36   : > { %v1987_v36 = vadd.f32 %v1983_v57, %v1970_v22  ;;  %3095 = vtanh.f32 %v1989_v33 }
 0xe37   : > { %v1990_v37 = vmul.f32 0.7978846, %v1986_v6 }
 0xe38   : > { %v1991_v28 = vmul.f32 0.7978846, %v1987_v36 }
 0xe39   : > { %3097 = vtanh.f32 %v1990_v37 }
 0xe3a   : > { %3099 = vtanh.f32 %v1991_v28 }
 0xe3f   : > { %v3094_v42 = vpop.eup %3093 }
 0xe40   : > { %v3096_v43 = vpop.eup %3095  ;;  %v1996_v44 = vadd.f32 1.0, %v3094_v42 }
 0xe41   : > { %v1997_v46 = vadd.f32 1.0, %v3096_v43 }
 0xe42   : > { %v2000_v47 = vmul.f32 0.5, %v1996_v44 }
 0xe43   : > { %v3098_v48 = vpop.eup %3097  ;;  %v2001_v49 = vmul.f32 0.5, %v1997_v46 }
 0xe44   : > { %v3100_v50 = vpop.eup %3099  ;;  %v1998_v51 = vadd.f32 1.0, %v3098_v48  ;;  %v2004_v54 = vmul.f32 %v2000_v47, %v1962_v15 }
 0xe45   : > { %v2005_v52 = vmul.f32 %v2001_v49, %v1964_v17  ;;  %v1999_v53 = vadd.f32 1.0, %v3100_v50 }
 0xe46   : > { %v2002_v55 = vmul.f32 0.5, %v1998_v51 }
 0xe47   : > { %2111 = vmatprep.mubr.f32.mxu0 %v2005_v52  ;;  %v2003_v56 = vmul.f32 0.5, %v1999_v53 }
 0xe48   : > { %2112 = vmatmul.mubr.f32.vlgmr.msra.gmra.mrb[10].mxu0 %v2004_v54  ;;  %v2006_v59 = vmul.f32 %v2002_v55, %v1968_v20 }
 0xe49   : > { %v2007_v58 = vmul.f32 %v2003_v56, %v1970_v22 }
 0xe4b   : > { %2116 = vmatprep.mubr.f32.mxu0 %v2007_v58 }
 0xe4c   : > { %2117 = vmatmul.mubr.f32.gmra.mrb[12].mxu0 %v2006_v59 }
 0xf1b   : > { %v2497_v60 = vpop.f32.mrb[10].mxu0 }
 0xf1c   : > { %v2498_v26 = vpop.f32.mrb[11].mxu0 }
 0xf1d   : > { %v2499_v27 = vadd.f32 %v2498_v26, %v2497_v60 }
 0xf1f   : > { %v2114_v30 = vadd.f32 %v2499_v27, %v2389_v63  ;;  %v2500_v45 = vpop.f32.mrb[12].mxu0 }
 0xf20   : > { %v2501_v62 = vpop.f32.mrb[13].mxu0 }
 0xf21   : > { %v2122_v2 = vadd.f32 %v2114_v30, %v4208_v38  ;;  %v2502_v3 = vadd.f32 %v2501_v62, %v2500_v45 }
 0xf23   : > { %2124 = vst [vmem:[%s616_s19] sm:$0xff] %v2122_v2  ;;  %v2119_v4 = vadd.f32 %v2502_v3, %v2389_v63 }
 0xf25   : > { %v2123_v5 = vadd.f32 %v2119_v4, %v4205_v8 }
 0xf27   : > { %2125 = vst [vmem:[%s616_s19 + $0x8] sm:$0xff] %v2123_v5 }
 0xf28   : > { %3480 = shalt.err (!%p3477_p7)
}
 0xf29   : > { %s3481_s17 = scalar_lea.hbm %s4228_s21, 256  ;;  %s3485_s25 = scalar_lea.hbm %s4342_s1, 512 }
 0xf2a   : > { %p3482_p6 = scmp.ne.s32.totalorder %s4228_s21, %s3481_s17  ;;  %p3486_p13 = scmp.lt.u32.totalorder %s4228_s21, %s4342_s1 }
 0xf2b   : > { %p3487_p1 = scmp.lt.u32.totalorder %s3485_s25, %s3481_s17  ;;  %p3489_p2 = scmp.lt.u32.totalorder %s3481_s17, %s4228_s21 }
 0xf2c   : > { %p3483_p9 = pnand %p3482_p6, %p4343_p8 }
 0xf2d   : > { %p3488_p3 = por %p3487_p1, %p3486_p13 }
 0xf2e   : > { %p3484_p4 = pneg %p3483_p9 }
 0xf2f   : > { %p3490_p10 = por %p3489_p2, %p3488_p3 }
 0xf31   : > { %p3491_p11 = pnand %p3490_p10, %p3484_p4 }
 0xf33   : > { %3494 = shalt.err (!%p3491_p11)
}
 0xf34   : > { %s3583_s15 = smov 128   ;;  %s3584_s24 = smov 8  }
 0xf35   : > { %2879 = dma.vmem_to_hbm [thread:$0]  (%p4343_p8), %s4223_s23, 256, %s4228_s21, %s2127_s3, %s3583_s15, %s3583_s15, %s3584_s24  }
 0xf36 PF: > { %s4344_s20 = sld [smem:[#allocation32_spill]]  ;;  %p4345_p12 = scmp.ne.s32.totalorder %s4322_s30, 0 }
 0xf37   : > { %p4346_p0 = scmp.ge.s32.totalorder %s3557_s28, 2 }
 0xf39   : > { %p2923_p5 = pnand %p4346_p0, %p4345_p12 }
 0xf3c   : > { %s2155_s19 = sand.u32 1, %s4344_s20  }
 0xf3d   : > { %s2156_s17 = scalar_lea.sflag [#allocation4], %s2155_s19 }
 0xf3e   : > { %3540 = dma.done.wait (!%p2923_p5), %s2156_s17, 256  }
 0xf3f   : > { %3542 = vsyncadd (!%p2923_p5), %s2156_s17, 4294967040  ;;  %p32_p7 = scmp.ge.s32.totalorder %s3946_s18, 4   ;;  %s4347_s25 = smov %s3549_s26 }
 0xf40   : > { %s4348_s26 = smov %s3553_s27  ;;  %s4349_s27 = smov %s3957_s14 }
 0xf41   : > { %s4350_s28 = smov %s3946_s18  ;;  %34 = sbr.rel (!%p32_p7) target bundleno = 17 (0x11), region = 165 }
 0xf48   :  { %2161 = vsyncpa [#allocation3], 1 }
 0xf49   :  { %2163 = vsyncpa [#allocation3 + $0x1], 1 }
 0xf4a   :  { %2164 = vsyncpa [#allocation6], 1 }
 0xf4b   :  { %2165 = vsyncpa [#allocation9], 1 }
 0xf4c   :  { %2166 = vsyncpa [#allocation12], 1 }
 0xf4d   :  { %2167 = vsyncpa [#allocation15], 1 }
 0xf4e   :  { %2168 = vsyncpa [#allocation18], 1 }
 0xf4f   :  { %2169 = vsyncpa [#allocation21], 1 }
 0xf50   :  { %2170 = vsyncpa [#allocation4], 1 }
 0xf51   :  { %2172 = vsyncpa [#allocation4 + $0x1], 1 }

</bundles_post_ra>
